<compile_context>
chip_gen: v6e
topology: v6e:2x2x1
jax: 0.10.0
libtpu: 0.0.40
codegen_flags: <defaults>
</compile_context>

<pallas_src>
import functools
import math

import jax
import jax.numpy as jnp
from jax.experimental import pallas as pl
from jax.experimental.pallas import tpu as pltpu


# ---------------------------------------------------------------------------
# Pallas kernel: TB samples per grid step, everything fused, no VMEM scratch.
# ---------------------------------------------------------------------------
def encoder_kernel(x_ref, wqk_ref, wo_ref, wffn_ref, vec_ref, conv_ref,
                   bdiag_ref, o_ref, *, num_heads, head_dim, C, CQ, TB):
    R = TB * C                       # rows per grid step (TB samples x C tokens)
    NR1 = TB * CQ                    # rows of the first conv's output
    D = x_ref.shape[1]

    xf = x_ref[...]                  # (R, D) activation slab
    bdiag = bdiag_ref[...]           # (R, R) 0/1 same-sample mask

    # -------- unpack packed parameters (static value slices) -----------------
    vec = vec_ref[...]                                   # (4R + 3, D)
    ln1w, ln1b = vec[0:R, :], vec[R:2 * R, :]
    ln2w, ln2b = vec[2 * R:3 * R, :], vec[3 * R:4 * R, :]
    bq = vec[4 * R:4 * R + 1, :]                         # pre-scaled by 1/sqrt(dh)
    bo = vec[4 * R + 1:4 * R + 2, :]
    bffn = vec[4 * R + 2:4 * R + 3, :]

    conv = conv_ref[...]                                 # (NR1 + R, 3R + 1)
    c1w, c1b = conv[0:NR1, 0:3 * R], conv[0:NR1, 3 * R:3 * R + 1]
    c2w, c2b = conv[NR1:NR1 + R, 0:3 * NR1], conv[NR1:NR1 + R, 3 * R:3 * R + 1]

    # -------- fused q|k projection (v == k; 1/sqrt(dk) folded into wq/bq) ----
    qk = jnp.dot(xf, wqk_ref[...], preferred_element_type=jnp.float32)  # (R, 2D)
    q_all = qk[:, 0:D] + bq
    k_all = qk[:, D:2 * D]                               # also serves as v

    # -------- attention: softmax over the HEAD axis (legacy F.softmax(dim=None))
    # Scores are computed on the whole (R, dh) slab per head; cross-sample
    # blocks are over-compute on the MXU and are zeroed with `bdiag` before PV.
    scores = []
    for h in range(num_heads):
        qh = q_all[:, h * head_dim:(h + 1) * head_dim]
        kh = k_all[:, h * head_dim:(h + 1) * head_dim]
        scores.append(jax.lax.dot_general(
            qh, kh, (((1,), (1,)), ((), ())),
            preferred_element_type=jnp.float32))         # (R, R)
    m = scores[0]
    for sc in scores[1:]:
        m = jnp.maximum(m, sc)
    exps = [jnp.exp(sc - m) for sc in scores]            # all <= 1 (m = head max)
    denom = exps[0]
    for e in exps[1:]:
        denom = denom + e
    inv_denom = 1.0 / denom          # exact: approx reciprocal caused ~1e-2 err

    heads = []
    for h in range(num_heads):
        p = exps[h] * inv_denom * bdiag                  # zero cross-sample blocks
        vh = k_all[:, h * head_dim:(h + 1) * head_dim]
        heads.append(jnp.dot(p, vh, preferred_element_type=jnp.float32))  # (R, dh)
    att = jnp.concatenate(heads, axis=1)                 # (R, D), in registers

    att_o = jnp.dot(att, wo_ref[...], preferred_element_type=jnp.float32) + bo
    ff = jnp.dot(xf, wffn_ref[...], preferred_element_type=jnp.float32) + bffn

    # -------- per-sample LayerNorm over (C, D), batched via block-diag matmul -
    inv_cd = 1.0 / (C * D)

    def seg_mean(y):                 # per-sample mean, broadcast back to rows
        s = jnp.dot(bdiag, y, preferred_element_type=jnp.float32)   # (R, D)
        return jnp.sum(s, axis=1, keepdims=True) * inv_cd           # (R, 1)

    def layernorm(y, w, b):          # eps = 1e-5, affine params tiled per sample
        mu = seg_mean(y)
        yc = y - mu
        var = seg_mean(yc * yc)
        return yc * jax.lax.rsqrt(var + 1e-5) * w + b

    out = layernorm(att_o, ln1w, ln1b) + xf
    out2 = layernorm(ff, ln2w, ln2b) + out

    # -------- SEC: Conv1d(k=3, pad=1) over D + eval BN + LeakyReLU ------------
    # Taps built in registers; the conv is ONE block-diagonal fused-tap matmul
    # per layer, batched over the TB samples (BN + conv bias folded in wrapper).
    col = jax.lax.broadcasted_iota(jnp.int32, (1, D), 1)   # hoisted edge masks
    left_ok = col >= 1
    right_ok = col <= D - 2

    def conv_bn_lrelu(inp, w, b):
        x_left = jnp.where(left_ok, pltpu.roll(inp, shift=1, axis=1), 0.0)
        x_right = jnp.where(right_ok, pltpu.roll(inp, shift=D - 1, axis=1), 0.0)
        taps = jnp.concatenate([x_left, inp, x_right], axis=0)   # (3*rows, D)
        y = jnp.dot(w, taps, preferred_element_type=jnp.float32) + b
        return jnp.where(y > 0, y, 0.01 * y)                     # LeakyReLU(0.01)

    s1 = conv_bn_lrelu(out2, c1w, c1b)      # (TB*CQ, D)
    s2 = conv_bn_lrelu(s1, c2w, c2b)        # (R, D)

    o_ref[...] = (s2 + out2).astype(o_ref.dtype)     # single wide block store


# ---------------------------------------------------------------------------
# Wrapper: parameter folding / packing + pallas_call.
# ---------------------------------------------------------------------------
def _pick_tb(B, C, target_rows=256):
    """Largest divisor of B with tb*C <= target_rows and tb*C 8-aligned.

    Prefers a grid >= 2 so both v7x TensorCores get work; on single-core
    v5e/v6e pass tb=B explicitly for one big step.  Falls back to tb=B (block
    == full array, always layout-legal)."""
    cands = [t for t in range(1, B + 1)
             if B % t == 0 and t * C <= target_rows and (t * C) % 8 == 0]
    if not cands:
        return B
    multi = [t for t in cands if B // t >= 2]
    return max(multi) if multi else max(cands)


def channel_bc_encoder(x_in, p, *, num_heads, tb=None):
    B, Cm1, D = x_in.shape
    C = Cm1 + 1                       # + CLS token
    CQ = p["c1w"].shape[0]
    head_dim = D // num_heads
    assert D % num_heads == 0

    if tb is None:
        tb = _pick_tb(B, C)
    assert B % tb == 0
    assert (tb * C) % 8 == 0 or tb == B, "tb*C must be 8-aligned (or tb == B)"
    R = tb * C
    NR1 = tb * CQ

    # glue: prepend CLS token and flatten to (B*C, D) rows (plain JAX)
    cls = jnp.broadcast_to(p["cls"].reshape(1, 1, D), (B, 1, D)).astype(jnp.float32)
    x_full = jnp.concatenate([cls, x_in.astype(jnp.float32)], axis=1)   # (B, C, D)
    x_flat = x_full.reshape(B * C, D)

    # fused q|k weight with 1/sqrt(dk) folded into q (v reuses k -> no v weight)
    inv_sqrt_dk = 1.0 / math.sqrt(head_dim)
    wqk = jnp.concatenate([p["wq"].T * inv_sqrt_dk, p["wk"].T], axis=1)  # (D, 2D)
    bq_scaled = (p["bq"] * inv_sqrt_dk).astype(jnp.float32)
    wo_t = p["wo"].T.astype(jnp.float32)

    # fold the (purely linear) FFN: x@w1.T@w2.T + (b1@w2.T + b2)
    wffn = (p["w1"].T @ p["w2"].T).astype(jnp.float32)                   # (D, D)
    bffn = (p["b1"] @ p["w2"].T + p["b2"]).astype(jnp.float32)           # (D,)

    # pack small (*, D) params; LN affine params tiled to (R, D) rows
    vecp = jnp.concatenate([
        jnp.tile(p["ln1_w"], (tb, 1)), jnp.tile(p["ln1_b"], (tb, 1)),
        jnp.tile(p["ln2_w"], (tb, 1)), jnp.tile(p["ln2_b"], (tb, 1)),
        bq_scaled[None, :], p["bo"][None, :], bffn[None, :],
    ], axis=0).astype(jnp.float32)                                       # (4R+3, D)

    # fold eval-mode BatchNorm (+ conv bias) into fused-tap conv weight/bias
    def fold_conv(w, cb, g, beta, mean, var):
        scale = g / jnp.sqrt(var + 1e-5)                                 # (Cout,)
        wf = jnp.transpose(w, (0, 2, 1)).reshape(w.shape[0], -1)         # (Cout, 3*Cin)
        wf = wf * scale[:, None]
        bf = (cb - mean) * scale + beta                                  # (Cout,)
        return wf.astype(jnp.float32), bf.astype(jnp.float32)

    # block-diagonal replication over the TB samples (one matmul per conv/step)
    def blockdiag_taps(wf, cin):
        eye = jnp.eye(tb, dtype=jnp.float32)
        return jnp.concatenate(
            [jnp.kron(eye, wf[:, k * cin:(k + 1) * cin]) for k in range(3)], axis=1)

    c1wf, c1bf = fold_conv(p["c1w"], p["c1b"], p["bn1_g"], p["bn1_b"],
                           p["bn1_m"], p["bn1_v"])
    c2wf, c2bf = fold_conv(p["c2w"], p["c2b"], p["bn2_g"], p["bn2_b"],
                           p["bn2_m"], p["bn2_v"])
    W1 = blockdiag_taps(c1wf, C)            # (tb*CQ, 3R)
    W2 = blockdiag_taps(c2wf, CQ)           # (R, 3*tb*CQ)
    conv_w = 3 * R + 1
    convp = jnp.zeros((NR1 + R, conv_w), jnp.float32)
    convp = convp.at[0:NR1, 0:3 * R].set(W1)
    convp = convp.at[0:NR1, 3 * R].set(jnp.tile(c1bf, tb))
    convp = convp.at[NR1:NR1 + R, 0:3 * NR1].set(W2)
    convp = convp.at[NR1:NR1 + R, 3 * R].set(jnp.tile(c2bf, tb))

    # block-diagonal (same-sample) 0/1 mask, shared by attention + LayerNorm
    sid = jnp.repeat(jnp.arange(tb), C)
    bdiag = (sid[:, None] == sid[None, :]).astype(jnp.float32)           # (R, R)

    full2 = lambda b: (0, 0)

    out_flat = pl.pallas_call(
        functools.partial(encoder_kernel, num_heads=num_heads,
                          head_dim=head_dim, C=C, CQ=CQ, TB=tb),
        out_shape=jax.ShapeDtypeStruct((B * C, D), jnp.float32),
        grid_spec=pltpu.PrefetchScalarGridSpec(
            num_scalar_prefetch=0,
            grid=(B // tb,),
            in_specs=[
                pl.BlockSpec((R, D), lambda b: (b, 0)),      # flattened x rows
                pl.BlockSpec((D, 2 * D), full2),             # [wq^T/sqrt(dk) | wk^T]
                pl.BlockSpec((D, D), full2),                 # wo^T
                pl.BlockSpec((D, D), full2),                 # folded FFN weight
                pl.BlockSpec((4 * R + 3, D), full2),         # packed LN / bias params
                pl.BlockSpec((NR1 + R, conv_w), full2),      # packed block-diag conv
                pl.BlockSpec((R, R), full2),                 # same-sample mask
            ],
            out_specs=pl.BlockSpec((R, D), lambda b: (b, 0)),
        ),
        compiler_params=pltpu.CompilerParams(
            dimension_semantics=("parallel",),
        ),
    )(x_flat, wqk, wo_t, wffn, vecp, convp, bdiag)

    return out_flat.reshape(B, C, D)


# ---------------------------------------------------------------------------
# Pure-JAX reference (mirrors the PyTorch forward, eval mode) for validation.
# ---------------------------------------------------------------------------
def reference(x_in, p, *, num_heads):
    B, Cm1, D = x_in.shape
    C = Cm1 + 1
    Dh = D // num_heads
    x = jnp.concatenate(
        [jnp.broadcast_to(p["cls"].reshape(1, 1, D), (B, 1, D)), x_in], axis=1)

    q = x @ p["wq"].T + p["bq"]
    k = x @ p["wk"].T
    v = x @ p["wk"].T                                  # v projected with wk (as in ref)
    split = lambda t: t.reshape(B, C, num_heads, Dh).transpose(0, 2, 1, 3)
    qh, kh, vh = split(q), split(k), split(v)
    s = jnp.einsum("bhqd,bhkd->bhqk", qh, kh) / math.sqrt(Dh)
    prob = jax.nn.softmax(s, axis=1)                   # legacy dim=1 (head axis)
    att = jnp.einsum("bhqk,bhkd->bhqd", prob, vh)
    att = att.transpose(0, 2, 1, 3).reshape(B, C, D)
    att = att @ p["wo"].T + p["bo"]

    def ln(y, w, b):
        mu = y.mean(axis=(1, 2), keepdims=True)
        var = ((y - mu) ** 2).mean(axis=(1, 2), keepdims=True)
        return (y - mu) / jnp.sqrt(var + 1e-5) * w + b

    out = ln(att, p["ln1_w"], p["ln1_b"]) + x
    ff = (x @ p["w1"].T + p["b1"]) @ p["w2"].T + p["b2"]
    out2 = ln(ff, p["ln2_w"], p["ln2_b"]) + out

    def conv1d(inp, w, b):                             # inp (B,Cin,D), w (Cout,Cin,3)
        pad = jnp.pad(inp, ((0, 0), (0, 0), (1, 1)))
        return (jnp.einsum("oi,bit->bot", w[:, :, 0], pad[:, :, 0:D])
                + jnp.einsum("oi,bit->bot", w[:, :, 1], pad[:, :, 1:D + 1])
                + jnp.einsum("oi,bit->bot", w[:, :, 2], pad[:, :, 2:D + 2])
                + b[None, :, None])

    def sec_block(inp, w, b, g, bt, m, vr):
        y = conv1d(inp, w, b)
        y = (y - m[None, :, None]) / jnp.sqrt(vr[None, :, None] + 1e-5) \
            * g[None, :, None] + bt[None, :, None]
        return jnp.where(y > 0, y, 0.01 * y)

    s1 = sec_block(out2, p["c1w"], p["c1b"], p["bn1_g"], p["bn1_b"],
                   p["bn1_m"], p["bn1_v"])
    s2 = sec_block(s1, p["c2w"], p["c2b"], p["bn2_g"], p["bn2_b"],
                   p["bn2_m"], p["bn2_v"])
    return s2 + out2


# ---------------------------------------------------------------------------
if __name__ == "__main__":
    # small shapes consistent with the module (TPU-friendly: tb*C 8-aligned)
    B = 8            # batch (tb=4 per grid step -> grid of 2)
    D = 64           # dim_model
    C = 8            # num_channels == sec_in_channels (input has C-1 tokens)
    H = 4            # num_heads
    DI = 128         # dim_inner
    SQ = 2           # squeeze_factor
    CQ = int(math.floor(C / SQ))

    key = jax.random.PRNGKey(0)
    ks = jax.random.split(key, 28)
    n = lambda k, s: (0.1 * jax.random.normal(k, s)).astype(jnp.float32)

    params = {
        "cls": n(ks[0], (1, 1, D)),
        "wq": n(ks[1], (D, D)), "bq": n(ks[2], (D,)),
        "wk": n(ks[3], (D, D)),
        "wo": n(ks[4], (D, D)), "bo": n(ks[5], (D,)),
        "ln1_w": 1.0 + n(ks[6], (C, D)), "ln1_b": n(ks[7], (C, D)),
        "w1": n(ks[8], (DI, D)), "b1": n(ks[9], (DI,)),
        "w2": n(ks[10], (D, DI)), "b2": n(ks[11], (D,)),
        "ln2_w": 1.0 + n(ks[12], (C, D)), "ln2_b": n(ks[13], (C, D)),
        "c1w": n(ks[14], (CQ, C, 3)), "c1b": n(ks[15], (CQ,)),
        "bn1_g": 1.0 + n(ks[16], (CQ,)), "bn1_b": n(ks[17], (CQ,)),
        "bn1_m": n(ks[18], (CQ,)), "bn1_v": 1.0 + jnp.abs(n(ks[19], (CQ,))),
        "c2w": n(ks[20], (C, CQ, 3)), "c2b": n(ks[21], (C,)),
        "bn2_g": 1.0 + n(ks[22], (C,)), "bn2_b": n(ks[23], (C,)),
        "bn2_m": n(ks[24], (C,)), "bn2_v": 1.0 + jnp.abs(n(ks[25], (C,))),
    }

    x = jax.random.normal(ks[26], (B, C - 1, D), jnp.float32)

    out = channel_bc_encoder(x, params, num_heads=H)
    out = jax.block_until_ready(out)

    ref = reference(x, params, num_heads=H)
    assert out.shape == (B, C, D), out.shape
    err = float(jnp.max(jnp.abs(out - ref)))
    assert err < 2e-3, f"max abs err = {err}"

    print("KERNEL_OK")
</pallas_src>

<mosaic_0001>
module attributes {stable_mosaic.version = 11 : i64} {
  func.func @encoder_kernel(%arg0: i32, %arg1: memref<32x64xf32, #tpu.memory_space<vmem>>, %arg2: memref<64x128xf32, #tpu.memory_space<vmem>>, %arg3: memref<64x64xf32, #tpu.memory_space<vmem>>, %arg4: memref<64x64xf32, #tpu.memory_space<vmem>>, %arg5: memref<131x64xf32, #tpu.memory_space<vmem>>, %arg6: memref<48x97xf32, #tpu.memory_space<vmem>>, %arg7: memref<32x32xf32, #tpu.memory_space<vmem>>, %arg8: memref<32x64xf32, #tpu.memory_space<vmem>>) attributes {dimension_semantics = [#tpu.dimension_semantics<parallel>], iteration_bounds = array<i64: 2>, scalar_prefetch = 0 : i64, scratch_operands = 0 : i64, tpu.core_type = #tpu.core_type<tc>, window_params = [{transform_indices = @transform_0, window_bounds = array<i64: 32, 64>}, {pipeline_mode = #tpu.pipeline_mode<synchronous>, transform_indices = @transform_1, window_bounds = array<i64: 64, 128>}, {pipeline_mode = #tpu.pipeline_mode<synchronous>, transform_indices = @transform_2, window_bounds = array<i64: 64, 64>}, {pipeline_mode = #tpu.pipeline_mode<synchronous>, transform_indices = @transform_3, window_bounds = array<i64: 64, 64>}, {pipeline_mode = #tpu.pipeline_mode<synchronous>, transform_indices = @transform_4, window_bounds = array<i64: 131, 64>}, {pipeline_mode = #tpu.pipeline_mode<synchronous>, transform_indices = @transform_5, window_bounds = array<i64: 48, 97>}, {pipeline_mode = #tpu.pipeline_mode<synchronous>, transform_indices = @transform_6, window_bounds = array<i64: 32, 32>}, {transform_indices = @transform_7, window_bounds = array<i64: 32, 64>}]} {
    %c0 = arith.constant 0 : index
    %c0_0 = arith.constant 0 : index
    %0 = vector.load %arg1[%c0, %c0_0] : memref<32x64xf32, #tpu.memory_space<vmem>>, vector<32x64xf32>
    %c0_1 = arith.constant 0 : index
    %c0_2 = arith.constant 0 : index
    %1 = vector.load %arg7[%c0_1, %c0_2] : memref<32x32xf32, #tpu.memory_space<vmem>>, vector<32x32xf32>
    %c0_3 = arith.constant 0 : index
    %c0_4 = arith.constant 0 : index
    %2 = vector.load %arg5[%c0_3, %c0_4] : memref<131x64xf32, #tpu.memory_space<vmem>>, vector<131x64xf32>
    %3 = vector.extract_strided_slice %2 {offsets = [0, 0], sizes = [32, 64], strides = [1, 1]} : vector<131x64xf32> to vector<32x64xf32>
    %4 = vector.extract_strided_slice %2 {offsets = [32, 0], sizes = [32, 64], strides = [1, 1]} : vector<131x64xf32> to vector<32x64xf32>
    %5 = vector.extract_strided_slice %2 {offsets = [64, 0], sizes = [32, 64], strides = [1, 1]} : vector<131x64xf32> to vector<32x64xf32>
    %6 = vector.extract_strided_slice %2 {offsets = [96, 0], sizes = [32, 64], strides = [1, 1]} : vector<131x64xf32> to vector<32x64xf32>
    %7 = vector.extract_strided_slice %2 {offsets = [128, 0], sizes = [1, 64], strides = [1, 1]} : vector<131x64xf32> to vector<1x64xf32>
    %8 = vector.extract_strided_slice %2 {offsets = [129, 0], sizes = [1, 64], strides = [1, 1]} : vector<131x64xf32> to vector<1x64xf32>
    %9 = vector.extract_strided_slice %2 {offsets = [130, 0], sizes = [1, 64], strides = [1, 1]} : vector<131x64xf32> to vector<1x64xf32>
    %c0_5 = arith.constant 0 : index
    %c0_6 = arith.constant 0 : index
    %10 = vector.load %arg6[%c0_5, %c0_6] : memref<48x97xf32, #tpu.memory_space<vmem>>, vector<48x97xf32>
    %11 = vector.extract_strided_slice %10 {offsets = [0, 0], sizes = [16, 96], strides = [1, 1]} : vector<48x97xf32> to vector<16x96xf32>
    %12 = vector.extract_strided_slice %10 {offsets = [0, 96], sizes = [16, 1], strides = [1, 1]} : vector<48x97xf32> to vector<16x1xf32>
    %13 = vector.extract_strided_slice %10 {offsets = [16, 0], sizes = [32, 48], strides = [1, 1]} : vector<48x97xf32> to vector<32x48xf32>
    %14 = vector.extract_strided_slice %10 {offsets = [16, 96], sizes = [32, 1], strides = [1, 1]} : vector<48x97xf32> to vector<32x1xf32>
    %c0_7 = arith.constant 0 : index
    %c0_8 = arith.constant 0 : index
    %15 = vector.load %arg2[%c0_7, %c0_8] : memref<64x128xf32, #tpu.memory_space<vmem>>, vector<64x128xf32>
    %cst = arith.constant dense<0.000000e+00> : vector<32x128xf32>
    %16 = tpu.matmul %0, %15, %cst {dimension_numbers = #tpu.dot_dimension_numbers<[1], [0], [0], [1], [0, 0, 1, 1], [], []>} : vector<32x64xf32>, vector<64x128xf32>, vector<32x128xf32> -> vector<32x128xf32>
    %17 = vector.extract_strided_slice %16 {offsets = [0, 0], sizes = [32, 64], strides = [1, 1]} : vector<32x128xf32> to vector<32x64xf32>
    %18 = vector.broadcast %7 : vector<1x64xf32> to vector<32x64xf32>
    %19 = arith.addf %17, %18 : vector<32x64xf32>
    %20 = vector.extract_strided_slice %16 {offsets = [0, 64], sizes = [32, 64], strides = [1, 1]} : vector<32x128xf32> to vector<32x64xf32>
    %21 = vector.extract_strided_slice %19 {offsets = [0, 0], sizes = [32, 16], strides = [1, 1]} : vector<32x64xf32> to vector<32x16xf32>
    %22 = vector.extract_strided_slice %20 {offsets = [0, 0], sizes = [32, 16], strides = [1, 1]} : vector<32x64xf32> to vector<32x16xf32>
    %cst_9 = arith.constant dense<0.000000e+00> : vector<32x32xf32>
    %23 = tpu.matmul %21, %22, %cst_9 {dimension_numbers = #tpu.dot_dimension_numbers<[1], [1], [0], [0], [0, 0, 1, 0], [], []>} : vector<32x16xf32>, vector<32x16xf32>, vector<32x32xf32> -> vector<32x32xf32>
    %24 = vector.extract_strided_slice %19 {offsets = [0, 16], sizes = [32, 16], strides = [1, 1]} : vector<32x64xf32> to vector<32x16xf32>
    %25 = vector.extract_strided_slice %20 {offsets = [0, 16], sizes = [32, 16], strides = [1, 1]} : vector<32x64xf32> to vector<32x16xf32>
    %cst_10 = arith.constant dense<0.000000e+00> : vector<32x32xf32>
    %26 = tpu.matmul %24, %25, %cst_10 {dimension_numbers = #tpu.dot_dimension_numbers<[1], [1], [0], [0], [0, 0, 1, 0], [], []>} : vector<32x16xf32>, vector<32x16xf32>, vector<32x32xf32> -> vector<32x32xf32>
    %27 = vector.extract_strided_slice %19 {offsets = [0, 32], sizes = [32, 16], strides = [1, 1]} : vector<32x64xf32> to vector<32x16xf32>
    %28 = vector.extract_strided_slice %20 {offsets = [0, 32], sizes = [32, 16], strides = [1, 1]} : vector<32x64xf32> to vector<32x16xf32>
    %cst_11 = arith.constant dense<0.000000e+00> : vector<32x32xf32>
    %29 = tpu.matmul %27, %28, %cst_11 {dimension_numbers = #tpu.dot_dimension_numbers<[1], [1], [0], [0], [0, 0, 1, 0], [], []>} : vector<32x16xf32>, vector<32x16xf32>, vector<32x32xf32> -> vector<32x32xf32>
    %30 = vector.extract_strided_slice %19 {offsets = [0, 48], sizes = [32, 16], strides = [1, 1]} : vector<32x64xf32> to vector<32x16xf32>
    %31 = vector.extract_strided_slice %20 {offsets = [0, 48], sizes = [32, 16], strides = [1, 1]} : vector<32x64xf32> to vector<32x16xf32>
    %cst_12 = arith.constant dense<0.000000e+00> : vector<32x32xf32>
    %32 = tpu.matmul %30, %31, %cst_12 {dimension_numbers = #tpu.dot_dimension_numbers<[1], [1], [0], [0], [0, 0, 1, 0], [], []>} : vector<32x16xf32>, vector<32x16xf32>, vector<32x32xf32> -> vector<32x32xf32>
    %33 = arith.maximumf %23, %26 : vector<32x32xf32>
    %34 = arith.maximumf %33, %29 : vector<32x32xf32>
    %35 = arith.maximumf %34, %32 : vector<32x32xf32>
    %36 = arith.subf %23, %35 : vector<32x32xf32>
    %37 = math.exp %36 : vector<32x32xf32>
    %38 = arith.subf %26, %35 : vector<32x32xf32>
    %39 = math.exp %38 : vector<32x32xf32>
    %40 = arith.subf %29, %35 : vector<32x32xf32>
    %41 = math.exp %40 : vector<32x32xf32>
    %42 = arith.subf %32, %35 : vector<32x32xf32>
    %43 = math.exp %42 : vector<32x32xf32>
    %44 = arith.addf %37, %39 : vector<32x32xf32>
    %45 = arith.addf %44, %41 : vector<32x32xf32>
    %46 = arith.addf %45, %43 : vector<32x32xf32>
    %cst_13 = arith.constant 1.000000e+00 : f32
    %47 = vector.broadcast %cst_13 : f32 to vector<32x32xf32>
    %48 = arith.divf %47, %46 : vector<32x32xf32>
    %49 = arith.mulf %37, %48 : vector<32x32xf32>
    %50 = arith.mulf %49, %1 : vector<32x32xf32>
    %51 = vector.extract_strided_slice %20 {offsets = [0, 0], sizes = [32, 16], strides = [1, 1]} : vector<32x64xf32> to vector<32x16xf32>
    %cst_14 = arith.constant dense<0.000000e+00> : vector<32x16xf32>
    %52 = tpu.matmul %50, %51, %cst_14 {dimension_numbers = #tpu.dot_dimension_numbers<[1], [0], [0], [1], [0, 0, 1, 1], [], []>} : vector<32x32xf32>, vector<32x16xf32>, vector<32x16xf32> -> vector<32x16xf32>
    %53 = arith.mulf %39, %48 : vector<32x32xf32>
    %54 = arith.mulf %53, %1 : vector<32x32xf32>
    %55 = vector.extract_strided_slice %20 {offsets = [0, 16], sizes = [32, 16], strides = [1, 1]} : vector<32x64xf32> to vector<32x16xf32>
    %cst_15 = arith.constant dense<0.000000e+00> : vector<32x16xf32>
    %56 = tpu.matmul %54, %55, %cst_15 {dimension_numbers = #tpu.dot_dimension_numbers<[1], [0], [0], [1], [0, 0, 1, 1], [], []>} : vector<32x32xf32>, vector<32x16xf32>, vector<32x16xf32> -> vector<32x16xf32>
    %57 = arith.mulf %41, %48 : vector<32x32xf32>
    %58 = arith.mulf %57, %1 : vector<32x32xf32>
    %59 = vector.extract_strided_slice %20 {offsets = [0, 32], sizes = [32, 16], strides = [1, 1]} : vector<32x64xf32> to vector<32x16xf32>
    %cst_16 = arith.constant dense<0.000000e+00> : vector<32x16xf32>
    %60 = tpu.matmul %58, %59, %cst_16 {dimension_numbers = #tpu.dot_dimension_numbers<[1], [0], [0], [1], [0, 0, 1, 1], [], []>} : vector<32x32xf32>, vector<32x16xf32>, vector<32x16xf32> -> vector<32x16xf32>
    %61 = arith.mulf %43, %48 : vector<32x32xf32>
    %62 = arith.mulf %61, %1 : vector<32x32xf32>
    %63 = vector.extract_strided_slice %20 {offsets = [0, 48], sizes = [32, 16], strides = [1, 1]} : vector<32x64xf32> to vector<32x16xf32>
    %cst_17 = arith.constant dense<0.000000e+00> : vector<32x16xf32>
    %64 = tpu.matmul %62, %63, %cst_17 {dimension_numbers = #tpu.dot_dimension_numbers<[1], [0], [0], [1], [0, 0, 1, 1], [], []>} : vector<32x32xf32>, vector<32x16xf32>, vector<32x16xf32> -> vector<32x16xf32>
    %65 = tpu.concatenate %52, %56, %60, %64 in 1 : vector<32x16xf32>, vector<32x16xf32>, vector<32x16xf32>, vector<32x16xf32> -> vector<32x64xf32>
    %c0_18 = arith.constant 0 : index
    %c0_19 = arith.constant 0 : index
    %66 = vector.load %arg3[%c0_18, %c0_19] : memref<64x64xf32, #tpu.memory_space<vmem>>, vector<64x64xf32>
    %cst_20 = arith.constant dense<0.000000e+00> : vector<32x64xf32>
    %67 = tpu.matmul %65, %66, %cst_20 {dimension_numbers = #tpu.dot_dimension_numbers<[1], [0], [0], [1], [0, 0, 1, 1], [], []>} : vector<32x64xf32>, vector<64x64xf32>, vector<32x64xf32> -> vector<32x64xf32>
    %68 = vector.broadcast %8 : vector<1x64xf32> to vector<32x64xf32>
    %69 = arith.addf %67, %68 : vector<32x64xf32>
    %c0_21 = arith.constant 0 : index
    %c0_22 = arith.constant 0 : index
    %70 = vector.load %arg4[%c0_21, %c0_22] : memref<64x64xf32, #tpu.memory_space<vmem>>, vector<64x64xf32>
    %cst_23 = arith.constant dense<0.000000e+00> : vector<32x64xf32>
    %71 = tpu.matmul %0, %70, %cst_23 {dimension_numbers = #tpu.dot_dimension_numbers<[1], [0], [0], [1], [0, 0, 1, 1], [], []>} : vector<32x64xf32>, vector<64x64xf32>, vector<32x64xf32> -> vector<32x64xf32>
    %72 = vector.broadcast %9 : vector<1x64xf32> to vector<32x64xf32>
    %73 = arith.addf %71, %72 : vector<32x64xf32>
    %cst_24 = arith.constant dense<0.000000e+00> : vector<32x64xf32>
    %74 = tpu.matmul %1, %69, %cst_24 {dimension_numbers = #tpu.dot_dimension_numbers<[1], [0], [0], [1], [0, 0, 1, 1], [], []>} : vector<32x32xf32>, vector<32x64xf32>, vector<32x64xf32> -> vector<32x64xf32>
    %cst_25 = arith.constant dense<0.000000e+00> : vector<32xf32>
    %75 = vector.multi_reduction <add>, %74, %cst_25 [1] : vector<32x64xf32> to vector<32xf32>
    %76 = vector.shape_cast %75 : vector<32xf32> to vector<32x1xf32>
    %cst_26 = arith.constant 0.001953125 : f32
    %77 = vector.broadcast %cst_26 : f32 to vector<32x1xf32>
    %78 = arith.mulf %76, %77 : vector<32x1xf32>
    %79 = vector.broadcast %78 : vector<32x1xf32> to vector<32x64xf32>
    %80 = arith.subf %69, %79 : vector<32x64xf32>
    %81 = arith.mulf %80, %80 : vector<32x64xf32>
    %cst_27 = arith.constant dense<0.000000e+00> : vector<32x64xf32>
    %82 = tpu.matmul %1, %81, %cst_27 {dimension_numbers = #tpu.dot_dimension_numbers<[1], [0], [0], [1], [0, 0, 1, 1], [], []>} : vector<32x32xf32>, vector<32x64xf32>, vector<32x64xf32> -> vector<32x64xf32>
    %cst_28 = arith.constant dense<0.000000e+00> : vector<32xf32>
    %83 = vector.multi_reduction <add>, %82, %cst_28 [1] : vector<32x64xf32> to vector<32xf32>
    %84 = vector.shape_cast %83 : vector<32xf32> to vector<32x1xf32>
    %cst_29 = arith.constant 0.001953125 : f32
    %85 = vector.broadcast %cst_29 : f32 to vector<32x1xf32>
    %86 = arith.mulf %84, %85 : vector<32x1xf32>
    %cst_30 = arith.constant 9.99999974E-6 : f32
    %87 = vector.broadcast %cst_30 : f32 to vector<32x1xf32>
    %88 = arith.addf %86, %87 : vector<32x1xf32>
    %89 = math.rsqrt %88 : vector<32x1xf32>
    %90 = vector.broadcast %89 : vector<32x1xf32> to vector<32x64xf32>
    %91 = arith.mulf %80, %90 : vector<32x64xf32>
    %92 = arith.mulf %91, %3 : vector<32x64xf32>
    %93 = arith.addf %92, %4 : vector<32x64xf32>
    %94 = arith.addf %93, %0 : vector<32x64xf32>
    %cst_31 = arith.constant dense<0.000000e+00> : vector<32x64xf32>
    %95 = tpu.matmul %1, %73, %cst_31 {dimension_numbers = #tpu.dot_dimension_numbers<[1], [0], [0], [1], [0, 0, 1, 1], [], []>} : vector<32x32xf32>, vector<32x64xf32>, vector<32x64xf32> -> vector<32x64xf32>
    %cst_32 = arith.constant dense<0.000000e+00> : vector<32xf32>
    %96 = vector.multi_reduction <add>, %95, %cst_32 [1] : vector<32x64xf32> to vector<32xf32>
    %97 = vector.shape_cast %96 : vector<32xf32> to vector<32x1xf32>
    %cst_33 = arith.constant 0.001953125 : f32
    %98 = vector.broadcast %cst_33 : f32 to vector<32x1xf32>
    %99 = arith.mulf %97, %98 : vector<32x1xf32>
    %100 = vector.broadcast %99 : vector<32x1xf32> to vector<32x64xf32>
    %101 = arith.subf %73, %100 : vector<32x64xf32>
    %102 = arith.mulf %101, %101 : vector<32x64xf32>
    %cst_34 = arith.constant dense<0.000000e+00> : vector<32x64xf32>
    %103 = tpu.matmul %1, %102, %cst_34 {dimension_numbers = #tpu.dot_dimension_numbers<[1], [0], [0], [1], [0, 0, 1, 1], [], []>} : vector<32x32xf32>, vector<32x64xf32>, vector<32x64xf32> -> vector<32x64xf32>
    %cst_35 = arith.constant dense<0.000000e+00> : vector<32xf32>
    %104 = vector.multi_reduction <add>, %103, %cst_35 [1] : vector<32x64xf32> to vector<32xf32>
    %105 = vector.shape_cast %104 : vector<32xf32> to vector<32x1xf32>
    %cst_36 = arith.constant 0.001953125 : f32
    %106 = vector.broadcast %cst_36 : f32 to vector<32x1xf32>
    %107 = arith.mulf %105, %106 : vector<32x1xf32>
    %cst_37 = arith.constant 9.99999974E-6 : f32
    %108 = vector.broadcast %cst_37 : f32 to vector<32x1xf32>
    %109 = arith.addf %107, %108 : vector<32x1xf32>
    %110 = math.rsqrt %109 : vector<32x1xf32>
    %111 = vector.broadcast %110 : vector<32x1xf32> to vector<32x64xf32>
    %112 = arith.mulf %101, %111 : vector<32x64xf32>
    %113 = arith.mulf %112, %5 : vector<32x64xf32>
    %114 = arith.addf %113, %6 : vector<32x64xf32>
    %115 = arith.addf %114, %94 : vector<32x64xf32>
    %116 = tpu.iota {dimensions = array<i32: 1>} : vector<1x64xi32>
    %c1_i32 = arith.constant 1 : i32
    %117 = vector.broadcast %c1_i32 : i32 to vector<1x64xi32>
    %118 = arith.cmpi sge, %116, %117 : vector<1x64xi32>
    %c62_i32 = arith.constant 62 : i32
    %119 = vector.broadcast %c62_i32 : i32 to vector<1x64xi32>
    %120 = arith.cmpi sle, %116, %119 : vector<1x64xi32>
    %c1_i32_38 = arith.constant 1 : i32
    %121 = tpu.dynamic_rotate %115 by %c1_i32_38 dim 1 : vector<32x64xf32>, i32 -> vector<32x64xf32>
    %cst_39 = arith.constant 0.000000e+00 : f32
    %122 = vector.shape_cast %118 : vector<1x64xi1> to vector<1x64xi1>
    %123 = vector.broadcast %122 : vector<1x64xi1> to vector<32x64xi1>
    %124 = vector.broadcast %cst_39 : f32 to vector<32x64xf32>
    %125 = arith.select %123, %121, %124 : vector<32x64xi1>, vector<32x64xf32>
    %c63_i32 = arith.constant 63 : i32
    %126 = tpu.dynamic_rotate %115 by %c63_i32 dim 1 : vector<32x64xf32>, i32 -> vector<32x64xf32>
    %cst_40 = arith.constant 0.000000e+00 : f32
    %127 = vector.shape_cast %120 : vector<1x64xi1> to vector<1x64xi1>
    %128 = vector.broadcast %127 : vector<1x64xi1> to vector<32x64xi1>
    %129 = vector.broadcast %cst_40 : f32 to vector<32x64xf32>
    %130 = arith.select %128, %126, %129 : vector<32x64xi1>, vector<32x64xf32>
    %131 = tpu.concatenate %125, %115, %130 in 0 : vector<32x64xf32>, vector<32x64xf32>, vector<32x64xf32> -> vector<96x64xf32>
    %cst_41 = arith.constant dense<0.000000e+00> : vector<16x64xf32>
    %132 = tpu.matmul %11, %131, %cst_41 {dimension_numbers = #tpu.dot_dimension_numbers<[1], [0], [0], [1], [0, 0, 1, 1], [], []>} : vector<16x96xf32>, vector<96x64xf32>, vector<16x64xf32> -> vector<16x64xf32>
    %133 = vector.broadcast %12 : vector<16x1xf32> to vector<16x64xf32>
    %134 = arith.addf %132, %133 : vector<16x64xf32>
    %cst_42 = arith.constant 0.000000e+00 : f32
    %135 = vector.broadcast %cst_42 : f32 to vector<16x64xf32>
    %136 = arith.cmpf ogt, %134, %135 : vector<16x64xf32>
    %cst_43 = arith.constant 0.00999999977 : f32
    %137 = vector.broadcast %cst_43 : f32 to vector<16x64xf32>
    %138 = arith.mulf %137, %134 : vector<16x64xf32>
    %139 = arith.select %136, %134, %138 : vector<16x64xi1>, vector<16x64xf32>
    %c1_i32_44 = arith.constant 1 : i32
    %140 = tpu.dynamic_rotate %139 by %c1_i32_44 dim 1 : vector<16x64xf32>, i32 -> vector<16x64xf32>
    %cst_45 = arith.constant 0.000000e+00 : f32
    %141 = vector.shape_cast %118 : vector<1x64xi1> to vector<1x64xi1>
    %142 = vector.broadcast %141 : vector<1x64xi1> to vector<16x64xi1>
    %143 = vector.broadcast %cst_45 : f32 to vector<16x64xf32>
    %144 = arith.select %142, %140, %143 : vector<16x64xi1>, vector<16x64xf32>
    %c63_i32_46 = arith.constant 63 : i32
    %145 = tpu.dynamic_rotate %139 by %c63_i32_46 dim 1 : vector<16x64xf32>, i32 -> vector<16x64xf32>
    %cst_47 = arith.constant 0.000000e+00 : f32
    %146 = vector.shape_cast %120 : vector<1x64xi1> to vector<1x64xi1>
    %147 = vector.broadcast %146 : vector<1x64xi1> to vector<16x64xi1>
    %148 = vector.broadcast %cst_47 : f32 to vector<16x64xf32>
    %149 = arith.select %147, %145, %148 : vector<16x64xi1>, vector<16x64xf32>
    %150 = tpu.concatenate %144, %139, %149 in 0 : vector<16x64xf32>, vector<16x64xf32>, vector<16x64xf32> -> vector<48x64xf32>
    %cst_48 = arith.constant dense<0.000000e+00> : vector<32x64xf32>
    %151 = tpu.matmul %13, %150, %cst_48 {dimension_numbers = #tpu.dot_dimension_numbers<[1], [0], [0], [1], [0, 0, 1, 1], [], []>} : vector<32x48xf32>, vector<48x64xf32>, vector<32x64xf32> -> vector<32x64xf32>
    %152 = vector.broadcast %14 : vector<32x1xf32> to vector<32x64xf32>
    %153 = arith.addf %151, %152 : vector<32x64xf32>
    %cst_49 = arith.constant 0.000000e+00 : f32
    %154 = vector.broadcast %cst_49 : f32 to vector<32x64xf32>
    %155 = arith.cmpf ogt, %153, %154 : vector<32x64xf32>
    %cst_50 = arith.constant 0.00999999977 : f32
    %156 = vector.broadcast %cst_50 : f32 to vector<32x64xf32>
    %157 = arith.mulf %156, %153 : vector<32x64xf32>
    %158 = arith.select %155, %153, %157 : vector<32x64xi1>, vector<32x64xf32>
    %159 = arith.addf %158, %115 : vector<32x64xf32>
    %c0_51 = arith.constant 0 : index
    %c0_52 = arith.constant 0 : index
    %160 = vector.load %arg8[%c0_51, %c0_52] : memref<32x64xf32, #tpu.memory_space<vmem>>, vector<32x64xf32>
    tpu.vector_store %arg8[%c0_51, %c0_52], %159 {strides = array<i32>} : memref<32x64xf32, #tpu.memory_space<vmem>>, vector<32x64xf32>,
    return
  }
  func.func @transform_0(%arg0: i32) -> (i32, i32) {
    %c0_i32 = arith.constant 0 : i32
    %c0_i32_0 = arith.constant 0 : i32
    return %arg0, %c0_i32 : i32, i32
  }
  func.func @transform_1(%arg0: i32) -> (i32, i32) {
    %c0_i32 = arith.constant 0 : i32
    %c0_i32_0 = arith.constant 0 : i32
    %c0_i32_1 = arith.constant 0 : i32
    return %c0_i32, %c0_i32_0 : i32, i32
  }
  func.func @transform_2(%arg0: i32) -> (i32, i32) {
    %c0_i32 = arith.constant 0 : i32
    %c0_i32_0 = arith.constant 0 : i32
    %c0_i32_1 = arith.constant 0 : i32
    return %c0_i32, %c0_i32_0 : i32, i32
  }
  func.func @transform_3(%arg0: i32) -> (i32, i32) {
    %c0_i32 = arith.constant 0 : i32
    %c0_i32_0 = arith.constant 0 : i32
    %c0_i32_1 = arith.constant 0 : i32
    return %c0_i32, %c0_i32_0 : i32, i32
  }
  func.func @transform_4(%arg0: i32) -> (i32, i32) {
    %c0_i32 = arith.constant 0 : i32
    %c0_i32_0 = arith.constant 0 : i32
    %c0_i32_1 = arith.constant 0 : i32
    return %c0_i32, %c0_i32_0 : i32, i32
  }
  func.func @transform_5(%arg0: i32) -> (i32, i32) {
    %c0_i32 = arith.constant 0 : i32
    %c0_i32_0 = arith.constant 0 : i32
    %c0_i32_1 = arith.constant 0 : i32
    return %c0_i32, %c0_i32_0 : i32, i32
  }
  func.func @transform_6(%arg0: i32) -> (i32, i32) {
    %c0_i32 = arith.constant 0 : i32
    %c0_i32_0 = arith.constant 0 : i32
    %c0_i32_1 = arith.constant 0 : i32
    return %c0_i32, %c0_i32_0 : i32, i32
  }
  func.func @transform_7(%arg0: i32) -> (i32, i32) {
    %c0_i32 = arith.constant 0 : i32
    %c0_i32_0 = arith.constant 0 : i32
    return %arg0, %c0_i32 : i32, i32
  }
}

</mosaic_0001>

<bundles_post_ra>
// kernel: tpu_custom_call.1
= control target key start
LH: loop header
LB: loop body
LE: loop exit
PB: predicated region body
PF: predicated region fallthrough
CT: control target
= control target key end

     0   :  { %12 = vsyncpa [#allocation3], 0  ;;  %s4271_s0 = inlined_call_operand.vmem [shape: f32[64,64], index: 0, kind: input, shape index: {}]   ;;  %s4272_s1 = inlined_call_operand.vmem [shape: f32[64,128], index: 1, kind: input, shape index: {}]   ;;  %s4273_s2 = inlined_call_operand.vmem [shape: f32[64,64], index: 2, kind: input, shape index: {}]   ;;  %s4274_s3 = inlined_call_operand.vmem [shape: f32[64,64], index: 3, kind: input, shape index: {}]   ;;  %s4275_s4 = inlined_call_operand.vmem [shape: f32[131,64], index: 4, kind: input, shape index: {}]   ;;  %s4276_s5 = inlined_call_operand.hbm [shape: f32[48,97], index: 5, kind: input, shape index: {}]   ;;  %s4277_s6 = inlined_call_operand.hbm [shape: f32[32,32], index: 6, kind: input, shape index: {}]   ;;  %s4278_s7 = inlined_call_operand.hbm [shape: f32[64,64], index: 7, kind: output, shape index: {}]  }
   0x1   :  { %13 = vsyncpa [#allocation6], 0 }
   0x2   :  { %14 = vsyncpa [#allocation4], 0 }
   0x3   :  { %16 = vsyncpa [#allocation4 + $0x1], 0  ;;  %s3475_s24 = smov 0   ;;  %s3477_s25 = smov 0  }
   0x4   :  { %s3479_s26 = smov 0   ;;  %s3481_s27 = smov 0  }
   0x5 LB: > { %s3496_s28 = sadd.s32 4294967295, %s3416_s27   ;;  %s2614_s29 = sadd.s32 4294967294, %s3416_s27   ;;  %s3416_s27 = sphi %s3481_s27, %s4292_s27   ;;  %s3412_s26 = sphi %s3479_s26, %s4291_s26   ;;  %s3408_s25 = sphi %s3477_s25, %s4290_s25   ;;  %s3404_s24 = sphi %s3475_s24, %s4289_s24  }
   0x6   : > { %s3500_s30 = sadd.s32 1, %s3416_s27   ;;  %s181_s8 = sadd.s32 1, %s3412_s26 }
   0x7   : > { %s178_s9 = ssub.s32 %s3416_s27, %s3500_s30  ;;  %p191_p0 = scmp.ne.s32.totalorder %s3412_s26, %s3408_s25 }
   0x8   : > { %p179_p1 = scmp.eq.s32.totalorder %s178_s9, 0  ;;  %p192_p2 = scmp.eq.s32.totalorder %s3496_s28, 1 }
   0x9   : > { %p197_p3 = scmp.ne.s32.totalorder %s3408_s25, %s3404_s24  ;;  %p198_p4 = scmp.eq.s32.totalorder %s2614_s29, 1 }
   0xa   : > { %s3511_s10 = scalar_select %p179_p1, %s3412_s26, %s181_s8  }
   0xb   : > { %p3513_p5 = por %p192_p2, %p191_p0  ;;  %p3517_p6 = por %p198_p4, %p197_p3 }
   0xc   : > { %p2615_p7 = scmp.ge.s32.totalorder %s3416_s27, 1  ;;  %p205_p8 = scmp.lt.s32.totalorder %s3416_s27, 3 }
   0xd   : > { %s4281_s12 = scalar_select %p3517_p6, 1, 0 }
   0xe   : > { %p4279_p9 = scmp.eq.s32.totalorder %s3496_s28, 0  ;;  %p3524_p10 = pnand %p2615_p7, %p205_p8 }
   0xf   : > { %s3418_s14 = smov [#allocation2]   ;;  %s3419_s17 = smov [#allocation5]  }
  0x10   : > { %s229_s15 = sshll.u32 %s3418_s14, 4  ;;  %p3170_p11 = pneg %p3524_p10  ;;  %s230_s15 = int_to_ptr.vmem [resolvable:$true] %s229_s15 }
  0x11   : > { %s242_s18 = sshll.u32 %s3419_s17, 4  ;;  %s3307_s19 = scalar_lea.vmem %s230_s15, 768  ;;  %s243_s18 = int_to_ptr.vmem [resolvable:$true] %s242_s18 }
  0x12   : > { %p3532_p12 = pnand %p4279_p9, %p3170_p11  ;;  %p3308_p0 = scmp.ne.s32.totalorder %s230_s15, %s3307_s19 }
  0x13   : > { %p3315_p3 = scmp.lt.s32.totalorder %s230_s15, %s230_s15  ;;  %p3316_p4 = scmp.lt.s32.totalorder %s3307_s19, %s3307_s19 }
  0x14   : > { %p3298_p13 = pneg %p3532_p12 }
  0x15   : > { %p3317_p7 = por %p3316_p4, %p3315_p3 }
  0x16   : > { %p3310_p1 = pnand %p3308_p0, %p3298_p13 }
  0x18   : > { %p3311_p2 = pneg %p3310_p1 }
  0x1a   : > { %p3318_p8 = pnand %p3317_p7, %p3311_p2 }
  0x1c   : > { %3321 = shalt.err (!%p3318_p8)
}
  0x1d   : > { %s3420_s20 = smov 128   ;;  %s3421_s21 = smov 8  }
  0x1e   : > { %3173 = dma.hbm_to_vmem [thread:$0]  (!%p3532_p12), %s4276_s5, 768, %s230_s15, [#allocation3], %s3420_s20, %s3420_s20, %s3421_s21  }
  0x1f   : > { %s3333_s29 = scalar_lea.vmem %s243_s18, 512  ;;  %p3341_p9 = scmp.lt.s32.totalorder %s243_s18, %s243_s18 }
  0x20   : > { %p3334_p11 = scmp.ne.s32.totalorder %s243_s18, %s3333_s29  ;;  %p3342_p6 = scmp.lt.s32.totalorder %s3333_s29, %s3333_s29 }
  0x22   : > { %p3336_p0 = pnand %p3334_p11, %p3298_p13  ;;  %p3343_p3 = por %p3342_p6, %p3341_p9 }
  0x24   : > { %p3337_p1 = pneg %p3336_p0 }
  0x26   : > { %p3344_p2 = pnand %p3343_p3, %p3337_p1 }
  0x28   : > { %3347 = shalt.err (!%p3344_p2)
}
  0x29   : > { %3176 = dma.hbm_to_vmem [thread:$0]  (!%p3532_p12), %s4277_s6, 512, %s243_s18, [#allocation6], %s3420_s20, %s3420_s20, %s3421_s21  }
  0x2a   : > { %267 = sbr.rel (%p3524_p10) target bundleno = 3083 (0xc0b), region = 48  ;;  %p4284_p4 = scmp.eq.s32.totalorder (!%p3524_p10), %s3496_s28, 0 }
  0x2f   : > { %3391 = dma.done.wait (%p4284_p4), [#allocation3], 768   ;;  %p4285_p13 = pmov %p4284_p4 }
  0x30   : > { %p4286_p7 = pmov %p4284_p4 }
  0x31   : > { %3393 = vsyncadd (%p4285_p13), [#allocation3], 4294966528 }
  0x32   : > { %3395 = dma.done.wait (%p4286_p7), [#allocation6], 512   ;;  %p4287_p6 = pmov %p4284_p4 }
  0x33   : > { %s2623_s14 = sshll.u32 %s3496_s28, 2  ;;  %v348_v0 = vld [vmem:[%s4272_s1 + $0x38] sm:$0xff]  ;;  %v347_v1 = vld [vmem:[%s4272_s1 + $0x30] sm:$0xff]  ;;  %vm349_vm0 = vcmask 523264   ;;  %v346_v2 = vld [vmem:[%s4272_s1 + $0x28] sm:$0xff]  ;;  %v447_v12 = vlaneseq  ;;  %s3422_s23 = smov 48  }
  0x34   : > { %3397 = vsyncadd (%p4287_p6), [#allocation6], 4294966784  ;;  %p304_p9 = scmp.lt.s32.totalorder %s2623_s14, 7  ;;  %2881 = vmatprep.subr.mxu0 %v348_v0  ;;  %v345_v4 = vld [vmem:[%s4272_s1 + $0x20] sm:$0xff]  ;;  %v344_v5 = vld [vmem:[%s4272_s1 + $0x18] sm:$0xff]  ;;  %s3423_s29 = smov 64  }
  0x35   : > { %2882 = vmatpush3.msra.mxu0 %v348_v0  ;;  %v343_v6 = vld [vmem:[%s4272_s1 + $0x10] sm:$0xff]  ;;  %v342_v7 = vld [vmem:[%s4272_s1 + $0x8] sm:$0xff]  ;;  %v341_v8 = vld [vmem:[%s4272_s1] sm:$0xff]  ;;  %v3615_v13 = vshrl.u32 %v447_v12, 7  ;;  %vm467_vm1 = vcmask 130048   ;;  %s3424_s8 = smov 32  }
  0x36   : > { %s4294_s14 = smov (!%p304_p9, %s2623_s14), 7  ;;  %2883 = vmatprep.subr.mxu0 %v347_v1  ;;  %v3621_v15 = vld [vmem:[%s4275_s4 + $0x80] sm:$0x7]  ;;  %s3425_s9 = smov 112   ;;  %vm1016_vm2 = vcmask 261120   ;;  %vm1497_vm3 = vcmask 392192  }
  0x37   : > { %s2624_s15 = sshll.u32 %s4294_s14, 3  ;;  %2884 = vmatpush3.msra.mxu0 %v347_v1  ;;  %v449_v14 = vsub.s32 0, %v3615_v13  ;;  %s3426_s14 = smov 16   ;;  %vm2192_vm4 = vcmask 1048064   ;;  %vm2267_vm5 = vcmask 785408  }
  0x38   : > { %s3568_s17 = scalar_lea.vmem %s4271_s0, %s2624_s15  ;;  %2885 = vmatprep.subr.mxu0 %v346_v2  ;;  %s3427_s15 = smov 96  }
  0x39   : > { %v3580_v3 = vld [vmem:[%s3568_s17] sm:$0xff]  ;;  %2886 = vmatpush3.msra.mxu0 %v346_v2  ;;  %v3600_v9 = vld [vmem:[%s3568_s17 + $0x8] sm:$0xff]  ;;  %v3603_v10 = vld [vmem:[%s3568_s17 + $0x10] sm:$0xff]  ;;  %v450_v17 = vrot.slane %v3621_v15, %v449_v14  ;;  %s3428_s16 = smov 80   ;;  %s2724_s20 = sshll.u32 %s3496_s28, 9 }
  0x3a   : > { %2897 = vmatprep.mubr.msk.f32.mxu0 %vm349_vm0, %v3580_v3  ;;  %2887 = vmatprep.subr.mxu0 %v345_v4  ;;  %v3610_v11 = vld [vmem:[%s3568_s17 + $0x18] sm:$0xff]  ;;  %s4222_s22 = scalar_lea.hbm %s4278_s7, %s2724_s20 }
  0x3b   : > { %2888 = vmatpush3.msra.mxu0 %v345_v4 }
  0x3c   : > { %2889 = vmatprep.subr.mxu0 %v344_v5 }
  0x3d   : > { %2890 = vmatpush3.msra.mxu0 %v344_v5 }
  0x3e   : > { %2891 = vmatprep.subr.mxu0 %v343_v6 }
  0x3f   : > { %2892 = vmatpush3.msra.mxu0 %v343_v6 }
  0x40   : > { %2893 = vmatprep.subr.mxu0 %v342_v7 }
  0x41   : > { %2894 = vmatpush3.msra.mxu0 %v342_v7 }
  0x42   : > { %2895 = vmatprep.subr.mxu0 %v341_v8 }
  0x43   : > { %2896 = vmatpush3.msra.mxu0 %v341_v8 }
  0x44   : > { %2898 = vmatmul.mubr.msk.f32.vlgmr.msra.gmra.mxu0 %vm349_vm0, %v3600_v9 }
  0x45   : > { %2900 = vmatprep.mubr.msk.f32.mxu0 %vm349_vm0, %v3603_v10 }
  0x48   : > { %2901 = vmatmul.mubr.msk.f32.gmra.mxu0 %vm349_vm0, %v3610_v11 }
 0x104   : > { %v2899_v16 = vpop.f32.mrf.mxu0 }
 0x105   : > { %583 = vrot.lane.b32.xlu1 %v2899_v16, %s3422_s23  ;;  %461 = vrot.lane.b32.xlu0 %v2899_v16, %s3423_s29  ;;  %v3629_v20 = vadd.f32 %v2899_v16, %v450_v17 }
 0x106   : > { %v428_v18 = vpop.f32.mrf.mxu0 }
 0x107   : > { %v451_v19 = vadd.f32 %v450_v17, %v428_v18 }
 0x108   : > { %v2902_v21 = vpop.f32.mrf.mxu0 }
 0x109   : > { %700 = vrot.lane.b32.xlu0 %v2899_v16, %s3424_s8  ;;  %581 = vrot.lane.b32.xlu1 %v428_v18, %s3422_s23  ;;  %v454_v24 = vadd.f32 %v2902_v21, %v450_v17 }
 0x10a   : > { %2911 = vmatprep.mubr.msk.f32.mxu1 %vm467_vm1, %v451_v19  ;;  %v438_v22 = vpop.f32.mrf.mxu0 }
 0x10b   : > { %v453_v23 = vadd.f32 %v450_v17, %v438_v22 }
 0x10d   : > { %575 = vrot.lane.b32.xlu1 %v3629_v20, %s3425_s9  ;;  %459 = vrot.lane.b32.xlu0 %v428_v18, %s3423_s29 }
 0x111   : > { %573 = vrot.lane.b32.xlu1 %v451_v19, %s3425_s9  ;;  %465 = vrot.lane.b32.xlu0 %v2902_v21, %s3423_s29 }
 0x115   : > { %587 = vrot.lane.b32.xlu0 %v2902_v21, %s3422_s23  ;;  %463 = vrot.lane.b32.xlu1 %v438_v22, %s3423_s29 }
 0x119   : > { %704 = vrot.lane.b32.xlu0 %v2902_v21, %s3424_s8  ;;  %585 = vrot.lane.b32.xlu1 %v438_v22, %s3422_s23 }
 0x11d   : > { %821 = vrot.lane.b32.xlu0 %v2902_v21, %s3426_s14  ;;  %817 = vrot.lane.b32.xlu1 %v2899_v16, %s3426_s14 }
 0x121   : > { %698 = vrot.lane.b32.xlu0 %v428_v18, %s3424_s8  ;;  %815 = vrot.lane.b32.xlu1 %v428_v18, %s3426_s14 }
 0x125   : > { %702 = vrot.lane.b32.xlu0 %v438_v22, %s3424_s8  ;;  %692 = vrot.lane.b32.xlu1 %v3629_v20, %s3427_s15 }
 0x129   : > { %690 = vrot.lane.b32.xlu0 %v451_v19, %s3427_s15  ;;  %819 = vrot.lane.b32.xlu1 %v438_v22, %s3426_s14 }
 0x12d   : > { %807 = vrot.lane.b32.xlu0 %v451_v19, %s3428_s16  ;;  %577 = vrot.lane.b32.xlu1 %v453_v23, %s3425_s9 }
 0x131   : > { %579 = vrot.lane.b32.xlu0 %v454_v24, %s3425_s9  ;;  %809 = vrot.lane.b32.xlu1 %v3629_v20, %s3428_s16 }
 0x135   : > { %694 = vrot.lane.b32.xlu0 %v453_v23, %s3427_s15  ;;  %696 = vrot.lane.b32.xlu1 %v454_v24, %s3427_s15  ;;  %s3432_s15 = smov [#allocation7]  }
 0x139   : > { %811 = vrot.lane.b32.xlu0 %v453_v23, %s3428_s16  ;;  %813 = vrot.lane.b32.xlu1 %v454_v24, %s3428_s16  ;;  %s3352_s16 = sshll.u32 %s3432_s15, 4  ;;  %s3353_s16 = int_to_ptr.vmem [resolvable:$false] %s3352_s16 }
 0x13a   : > { %s3354_s13 = scalar_lea.vmem %s3353_s16, 1024 }
 0x177   : > { %v3646_v25 = vpop.permute.xlu1 %583  ;;  %v3648_v26 = vpop.permute.xlu0 %461 }
 0x17b   : > { %v3650_v27 = vpop.permute.xlu0 %700  ;;  %v3652_v28 = vpop.permute.xlu1 %581 }
 0x17f   : > { %v576_v29 = vpop.permute.xlu1 %575  ;;  %v3654_v30 = vpop.permute.xlu0 %459 }
 0x183   : > { %v574_v31 = vpop.permute.xlu1 %573  ;;  %v466_v32 = vpop.permute.xlu0 %465 }
 0x184   : > { %2903 = vmatprep.subr.msk.mxu1 %vm467_vm1, %v466_v32  ;;  %2925 = vmatprep.mubr.msk.f32.mxu0 %vm467_vm1, %v574_v31 }
 0x185   : > { %2904 = vmatpush3.xpose.msk.msra.mxu1 %vm467_vm1, %v466_v32 }
 0x187   : > { %v3659_v33 = vpop.permute.xlu0 %587  ;;  %v464_v34 = vpop.permute.xlu1 %463 }
 0x188   : > { %2905 = vmatprep.subr.msk.mxu1 %vm467_vm1, %v464_v34  ;;  %2917 = vmatprep.subr.msk.mxu0 %vm467_vm1, %v3659_v33 }
 0x189   : > { %2906 = vmatpush3.xpose.msk.msra.mxu1 %vm467_vm1, %v464_v34  ;;  %2918 = vmatpush3.xpose.msk.msra.mxu0 %vm467_vm1, %v3659_v33 }
 0x18a   : > { %2907 = vmatprep.subr.msk.mxu1 %vm467_vm1, %v3648_v26 }
 0x18b   : > { %v705_v35 = vpop.permute.xlu0 %704  ;;  %v3669_v36 = vpop.permute.xlu1 %585 }
 0x18c   : > { %2919 = vmatprep.subr.msk.mxu0 %vm467_vm1, %v3669_v36 }
 0x18d   : > { %2908 = vmatpush3.xpose.msk.msra.mxu1 %vm467_vm1, %v3648_v26  ;;  %2920 = vmatpush3.xpose.msk.msra.mxu0 %vm467_vm1, %v3669_v36 }
 0x18e   : > { %2909 = vmatprep.subr.msk.mxu1 %vm467_vm1, %v3654_v30  ;;  %2921 = vmatprep.subr.msk.mxu0 %vm467_vm1, %v3646_v25 }
 0x18f   : > { %v3681_v37 = vpop.permute.xlu0 %821  ;;  %v3683_v38 = vpop.permute.xlu1 %817 }
 0x191   : > { %2910 = vmatpush3.xpose.msk.msra.mxu1 %vm467_vm1, %v3654_v30  ;;  %2922 = vmatpush3.xpose.msk.msra.mxu0 %vm467_vm1, %v3646_v25 }
 0x192   : > { %2923 = vmatprep.subr.msk.mxu0 %vm467_vm1, %v3652_v28  ;;  %2931 = vmatprep.subr.msk.mxu1 %vm467_vm1, %v705_v35 }
 0x193   : > { %v699_v39 = vpop.permute.xlu0 %698  ;;  %v3692_v40 = vpop.permute.xlu1 %815 }
 0x194   : > { %2912 = vmatmul.mubr.msk.f32.vlgmr.msra.gmra.mxu1 %vm467_vm1, %v3629_v20 }
 0x195   : > { %2914 = vmatprep.mubr.msk.f32.mxu1 %vm467_vm1, %v453_v23  ;;  %2924 = vmatpush3.xpose.msk.msra.mxu0 %vm467_vm1, %v3652_v28 }
 0x196   : > { %2932 = vmatpush3.xpose.msk.msra.mxu1 %vm467_vm1, %v705_v35  ;;  %2945 = vmatprep.subr.msk.mxu0 %vm467_vm1, %v3681_v37 }
 0x197   : > { %v703_v41 = vpop.permute.xlu0 %702  ;;  %v693_v42 = vpop.permute.xlu1 %692 }
 0x198   : > { %2915 = vmatmul.mubr.msk.f32.gmra.mxu1 %vm467_vm1, %v454_v24  ;;  %2926 = vmatmul.mubr.msk.f32.vlgmr.msra.gmra.mxu0 %vm467_vm1, %v576_v29 }
 0x199   : > { %2933 = vmatprep.subr.msk.mxu1 %vm467_vm1, %v703_v41  ;;  %2946 = vmatpush3.xpose.msk.msra.mxu0 %vm467_vm1, %v3681_v37 }
 0x19a   : > { %2934 = vmatpush3.xpose.msk.msra.mxu1 %vm467_vm1, %v703_v41 }
 0x19b   : > { %2935 = vmatprep.subr.msk.mxu1 %vm467_vm1, %v3650_v27  ;;  %v691_v43 = vpop.permute.xlu0 %690  ;;  %v3710_v44 = vpop.permute.xlu1 %819 }
 0x19c   : > { %2939 = vmatprep.mubr.msk.f32.mxu1 %vm467_vm1, %v691_v43  ;;  %2947 = vmatprep.subr.msk.mxu0 %vm467_vm1, %v3710_v44 }
 0x19d   : > { %2948 = vmatpush3.xpose.msk.msra.mxu0 %vm467_vm1, %v3710_v44 }
 0x19e   : > { %2936 = vmatpush3.xpose.msk.msra.mxu1 %vm467_vm1, %v3650_v27  ;;  %2949 = vmatprep.subr.msk.mxu0 %vm467_vm1, %v3683_v38 }
 0x19f   : > { %2937 = vmatprep.subr.msk.mxu1 %vm467_vm1, %v699_v39  ;;  %v808_v45 = vpop.permute.xlu0 %807  ;;  %v578_v46 = vpop.permute.xlu1 %577 }
 0x1a0   : > { %2928 = vmatprep.mubr.msk.f32.mxu0 %vm467_vm1, %v578_v46 }
 0x1a1   : > { %2950 = vmatpush3.xpose.msk.msra.mxu0 %vm467_vm1, %v3683_v38 }
 0x1a2   : > { %2938 = vmatpush3.xpose.msk.msra.mxu1 %vm467_vm1, %v699_v39  ;;  %2951 = vmatprep.subr.msk.mxu0 %vm467_vm1, %v3692_v40 }
 0x1a3   : > { %2959 = vmatprep.subr.mxu1 %v466_v32  ;;  %v580_v47 = vpop.permute.xlu0 %579  ;;  %v810_v48 = vpop.permute.xlu1 %809 }
 0x1a4   : > { %2929 = vmatmul.mubr.msk.f32.gmra.mxu0 %vm467_vm1, %v580_v47 }
 0x1a5   : > { %2940 = vmatmul.mubr.msk.f32.vlgmr.msra.gmra.mxu1 %vm467_vm1, %v693_v42  ;;  %2952 = vmatpush3.xpose.msk.msra.mxu0 %vm467_vm1, %v3692_v40 }
 0x1a6   : > { %2953 = vmatprep.mubr.msk.f32.mxu0 %vm467_vm1, %v808_v45  ;;  %2960 = vmatpush3.msra.mxu1 %v466_v32 }
 0x1a7   : > { %2961 = vmatprep.subr.mxu1 %v464_v34  ;;  %2987 = vmatprep.subr.mxu0 %v705_v35  ;;  %v695_v49 = vpop.permute.xlu0 %694  ;;  %v697_v50 = vpop.permute.xlu1 %696 }
 0x1a8   : > { %2962 = vmatpush3.msra.mxu1 %v464_v34  ;;  %2942 = vmatprep.mubr.msk.f32.mxu1 %vm467_vm1, %v695_v49 }
 0x1a9   : > { %2954 = vmatmul.mubr.msk.f32.vlgmr.msra.gmra.mxu0 %vm467_vm1, %v810_v48  ;;  %2963 = vmatprep.subr.mxu1 %v3648_v26 }
 0x1aa   : > { %2943 = vmatmul.mubr.msk.f32.gmra.mxu1 %vm467_vm1, %v697_v50  ;;  %2988 = vmatpush3.msra.mxu0 %v705_v35 }
 0x1ab   : > { %2964 = vmatpush3.msra.mxu1 %v3648_v26  ;;  %2989 = vmatprep.subr.mxu0 %v703_v41  ;;  %v812_v51 = vpop.permute.xlu0 %811  ;;  %v814_v52 = vpop.permute.xlu1 %813 }
 0x1ac   : > { %2965 = vmatprep.subr.mxu1 %v3654_v30  ;;  %2990 = vmatpush3.msra.mxu0 %v703_v41 }
 0x1ad   : > { %2966 = vmatpush3.msra.mxu1 %v3654_v30  ;;  %2956 = vmatprep.mubr.msk.f32.mxu0 %vm467_vm1, %v812_v51 }
 0x1ae   : > { %2973 = vmatprep.subr.mxu1 %v3659_v33  ;;  %2991 = vmatprep.subr.mxu0 %v3650_v27 }
 0x1af   : > { %2957 = vmatmul.mubr.msk.f32.gmra.mxu0 %vm467_vm1, %v814_v52 }
 0x1b0   : > { %2992 = vmatpush3.msra.mxu0 %v3650_v27 }
 0x1b1   : > { %2993 = vmatprep.subr.mxu0 %v699_v39 }
 0x1b2   : > { %2994 = vmatpush3.msra.mxu0 %v699_v39 }
 0x254   : > { %v2913_v53 = vpop.f32.mrf.mxu1 }
 0x256   : > { %v554_v54 = vpop.f32.mrf.mxu1 }
 0x258   : > { %v2927_v55 = vpop.f32.mrf.mxu0  ;;  %v2916_v56 = vpop.f32.mrf.mxu1 }
 0x259   : > { %v925_v61 = vmax.f32 %v2913_v53, %v2927_v55 }
 0x25a   : > { %v671_v57 = vpop.f32.mrf.mxu0  ;;  %v564_v58 = vpop.f32.mrf.mxu1 }
 0x25b   : > { %v924_v1 = vmax.f32 %v554_v54, %v671_v57 }
 0x264   : > { %v2930_v59 = vpop.f32.mrf.mxu0 }
 0x265   : > { %v2941_v60 = vpop.f32.mrf.mxu1  ;;  %v927_v6 = vmax.f32 %v2916_v56, %v2930_v59 }
 0x266   : > { %v681_v62 = vpop.f32.mrf.mxu0  ;;  %v929_v0 = vmax.f32 %v925_v61, %v2941_v60 }
 0x267   : > { %v788_v63 = vpop.f32.mrf.mxu1  ;;  %v926_v19 = vmax.f32 %v564_v58, %v681_v62 }
 0x268   : > { %v928_v7 = vmax.f32 %v924_v1, %v788_v63 }
 0x269   : > { %v2955_v2 = vpop.f32.mrf.mxu0 }
 0x26a   : > { %v933_v4 = vmax.f32 %v929_v0, %v2955_v2  ;;  %v2944_v5 = vpop.f32.mrf.mxu1 }
 0x26b   : > { %v905_v8 = vpop.f32.mrf.mxu0  ;;  %v931_v26 = vmax.f32 %v927_v6, %v2944_v5 }
 0x26c   : > { %v937_v14 = vsub.f32 %v2913_v53, %v933_v4  ;;  %v949_v16 = vsub.f32 %v2927_v55, %v933_v4  ;;  %v961_v17 = vsub.f32 %v2941_v60, %v933_v4  ;;  %v973_v18 = vsub.f32 %v2955_v2, %v933_v4  ;;  %v798_v21 = vpop.f32.mrf.mxu1 }
 0x26d   : > { %v932_v20 = vmax.f32 %v928_v7, %v905_v8  ;;  %v930_v35 = vmax.f32 %v926_v19, %v798_v21 }
 0x26e   : > { %v942_v22 = vmul.f32 1.442695, %v937_v14  ;;  %v954_v23 = vmul.f32 1.442695, %v949_v16  ;;  %v966_v24 = vmul.f32 1.442695, %v961_v17 }
 0x26f   : > { %v978_v27 = vmul.f32 1.442695, %v973_v18  ;;  %v936_v29 = vsub.f32 %v554_v54, %v932_v20  ;;  %v948_v30 = vsub.f32 %v671_v57, %v932_v20  ;;  %v960_v31 = vsub.f32 %v788_v63, %v932_v20  ;;  %v2958_v32 = vpop.f32.mrf.mxu0 }
 0x270   : > { %3236 = vpow2.f32 %v942_v22  ;;  %v972_v34 = vsub.f32 %v905_v8, %v932_v20  ;;  %v935_v39 = vmax.f32 %v931_v26, %v2958_v32 }
 0x271   : > { %3238 = vpow2.f32 %v954_v23  ;;  %v940_v41 = vmul.f32 1.442695, %v936_v29  ;;  %v952_v42 = vmul.f32 1.442695, %v948_v30  ;;  %v964_v43 = vmul.f32 1.442695, %v960_v31  ;;  %v915_v45 = vpop.f32.mrf.mxu0 }
 0x272   : > { %3240 = vpow2.f32 %v966_v24  ;;  %v976_v46 = vmul.f32 1.442695, %v972_v34  ;;  %v939_v47 = vsub.f32 %v2916_v56, %v935_v39  ;;  %v951_v48 = vsub.f32 %v2930_v59, %v935_v39 }
 0x273   : > { %3242 = vpow2.f32 %v978_v27  ;;  %v963_v49 = vsub.f32 %v2944_v5, %v935_v39  ;;  %v975_v50 = vsub.f32 %v2958_v32, %v935_v39  ;;  %v934_v51 = vmax.f32 %v930_v35, %v915_v45 }
 0x274   : > { %3244 = vpow2.f32 %v940_v41  ;;  %v946_v52 = vmul.f32 1.442695, %v939_v47  ;;  %v958_v53 = vmul.f32 1.442695, %v951_v48 }
 0x275   : > { %3246 = vpow2.f32 %v952_v42  ;;  %v938_v54 = vsub.f32 %v564_v58, %v934_v51  ;;  %v970_v55 = vmul.f32 1.442695, %v963_v49  ;;  %v950_v57 = vsub.f32 %v681_v62, %v934_v51 }
 0x276   : > { %3248 = vpow2.f32 %v964_v43  ;;  %v982_v60 = vmul.f32 1.442695, %v975_v50  ;;  %v962_v61 = vsub.f32 %v798_v21, %v934_v51  ;;  %v974_v59 = vsub.f32 %v915_v45, %v934_v51  ;;  %v3760_v45 = vld [vmem:[#allocation5] sm:$0xff]  ;;  %v3762_v50 = vld [vmem:[#allocation5 + $0x8] sm:$0xff] }
 0x277   : > { %3250 = vpow2.f32 %v976_v46  ;;  %v944_v63 = vmul.f32 1.442695, %v938_v54  ;;  %v956_v56 = vmul.f32 1.442695, %v950_v57 }
 0x278   : > { %3252 = vpow2.f32 %v946_v52  ;;  %v968_v0 = vmul.f32 1.442695, %v962_v61  ;;  %v980_v2 = vmul.f32 1.442695, %v974_v59 }
 0x279   : > { %3254 = vpow2.f32 %v958_v53 }
 0x27a   : > { %3256 = vpow2.f32 %v970_v55 }
 0x27b   : > { %3258 = vpow2.f32 %v982_v60  ;;  %v3774_v60 = vld [vmem:[#allocation5 + $0x10] sm:$0xff] }
 0x27c   : > { %3260 = vpow2.f32 %v944_v63 }
 0x27d   : > { %v3237_v1 = vpop.eup %3236  ;;  %3262 = vpow2.f32 %v956_v56 }
 0x27e   : > { %v3745_v4 = vpop.eup %3238  ;;  %3264 = vpow2.f32 %v968_v0  ;;  %v3777_v0 = vld [vmem:[#allocation5 + $0x18] sm:$0xff] }
 0x27f   : > { %v3241_v58 = vpop.eup %3240  ;;  %v985_v62 = vadd.f32 %v3745_v4, %v3237_v1  ;;  %3266 = vpow2.f32 %v980_v2 }
 0x280   : > { %v3748_v5 = vpop.eup %3242 }
 0x281   : > { %v3245_v6 = vpop.eup %3244  ;;  %v989_v7 = vadd.f32 %v3241_v58, %v985_v62 }
 0x282   : > { %v3247_v8 = vpop.eup %3246 }
 0x283   : > { %v3249_v14 = vpop.eup %3248  ;;  %v993_v16 = vadd.f32 %v3748_v5, %v989_v7  ;;  %v984_v17 = vadd.f32 %v3247_v8, %v3245_v6 }
 0x284   : > { %v3751_v18 = vpop.eup %3250 }
 0x285   : > { %v3253_v19 = vpop.eup %3252  ;;  %v988_v20 = vadd.f32 %v3249_v14, %v984_v17  ;;  %3268 = vrcp.f32 %v993_v16 }
 0x286   : > { %v3753_v21 = vpop.eup %3254 }
 0x287   : > { %v3257_v22 = vpop.eup %3256  ;;  %v992_v23 = vadd.f32 %v3751_v18, %v988_v20  ;;  %v987_v24 = vadd.f32 %v3753_v21, %v3253_v19 }
 0x288   : > { %v3757_v26 = vpop.eup %3258 }
 0x289   : > { %v3261_v27 = vpop.eup %3260  ;;  %3270 = vrcp.f32 %v992_v23  ;;  %v991_v29 = vadd.f32 %v3257_v22, %v987_v24  ;;  %v1506_v23 = vld [vmem:[%s4273_s2 + $0x20] sm:$0xff] }
 0x28a   : > { %v3263_v30 = vpop.eup %3262 }
 0x28b   : > { %v995_v31 = vadd.f32 %v3757_v26, %v991_v29  ;;  %v986_v32 = vadd.f32 %v3263_v30, %v3261_v27  ;;  %v3265_v34 = vpop.eup %3264  ;;  %v1504_v29 = vld [vmem:[%s4273_s2 + $0x10] sm:$0xff] }
 0x28c   : > { %v3267_v39 = vpop.eup %3266 }
 0x28d   : > { %v990_v35 = vadd.f32 %v3265_v34, %v986_v32  ;;  %3272 = vrcp.f32 %v995_v31 }
 0x28f   : > { %v994_v41 = vadd.f32 %v3267_v39, %v990_v35  ;;  %v1616_v35 = vld [vmem:[%s4274_s3 + $0x28] sm:$0xff] }
 0x291   : > { %3274 = vrcp.f32 %v994_v41 }
 0x292   : > { %v3269_v42 = vpop.eup %3268 }
 0x293   : > { %v1005_v46 = vmul.f32 %v3269_v42, %v3237_v1  ;;  %v1224_v47 = vmul.f32 %v3269_v42, %v3241_v58 }
 0x295   : > { %v1009_v53 = vmul.f32 %v1005_v46, %v3762_v50  ;;  %v1228_v54 = vmul.f32 %v1224_v47, %v3762_v50  ;;  %v1614_v47 = vld [vmem:[%s4274_s3 + $0x18] sm:$0xff] }
 0x296   : > { %v3271_v43 = vpop.eup %3270 }
 0x297   : > { %v1004_v48 = vmul.f32 %v3271_v43, %v3245_v6  ;;  %v1223_v49 = vmul.f32 %v3271_v43, %v3249_v14  ;;  %v1114_v1 = vmul.f32 %v3271_v43, %v3247_v8  ;;  %v1332_v14 = vmul.f32 %v3271_v43, %v3751_v18  ;;  %v1615_v43 = vld [vmem:[%s4274_s3 + $0x20] sm:$0xff] }
 0x299   : > { %v1008_v51 = vmul.f32 %v1004_v48, %v3760_v45  ;;  %v1227_v52 = vmul.f32 %v1223_v49, %v3760_v45  ;;  %v1118_v6 = vmul.f32 %v1114_v1, %v3760_v45  ;;  %v1336_v17 = vmul.f32 %v1332_v14, %v3760_v45  ;;  %v1613_v49 = vld [vmem:[%s4274_s3 + $0x10] sm:$0xff] }
 0x29a   : > { %v3273_v55 = vpop.eup %3272 }
 0x29b   : > { %2967 = vmatprep.mubr.msk.f32.mxu1 %vm1016_vm2, %v1008_v51  ;;  %2995 = vmatprep.mubr.msk.f32.mxu0 %vm1016_vm2, %v1227_v52  ;;  %v1007_v61 = vmul.f32 %v3273_v55, %v3253_v19  ;;  %v1226_v63 = vmul.f32 %v3273_v55, %v3257_v22  ;;  %v1507_v22 = vld [vmem:[%s4273_s2 + $0x28] sm:$0xff] }
 0x29c   : > { %2968 = vmatmul.mubr.msk.f32.vlgmr.msra.gmra.mxu1 %vm1016_vm2, %v1009_v53  ;;  %2996 = vmatmul.mubr.msk.f32.vlgmr.msra.gmra.mxu0 %vm1016_vm2, %v1228_v54  ;;  %v1612_v52 = vld [vmem:[%s4274_s3 + $0x8] sm:$0xff]  ;;  %v1611_v54 = vld [vmem:[%s4274_s3] sm:$0xff] }
 0x29d   : > { %2974 = vmatpush3.msra.mxu1 %v3659_v33  ;;  %v1011_v58 = vmul.f32 %v1007_v61, %v3777_v0  ;;  %v1230_v62 = vmul.f32 %v1226_v63, %v3777_v0 }
 0x29e   : > { %v3275_v57 = vpop.eup %3274  ;;  %2975 = vmatprep.subr.mxu1 %v3669_v36 }
 0x29f   : > { %2976 = vmatpush3.msra.mxu1 %v3669_v36  ;;  %v1006_v56 = vmul.f32 %v3275_v57, %v3261_v27  ;;  %v1225_v59 = vmul.f32 %v3275_v57, %v3265_v34  ;;  %v1115_v36 = vmul.f32 %v3269_v42, %v3745_v4  ;;  %v1116_v7 = vmul.f32 %v3275_v57, %v3263_v30  ;;  %v1618_v27 = vld [vmem:[%s4274_s3 + $0x38] sm:$0xff]  ;;  %v1617_v30 = vld [vmem:[%s4274_s3 + $0x30] sm:$0xff]  ;;  %v1503_v34 = vld [vmem:[%s4273_s2 + $0x8] sm:$0xff] }
 0x2a0   : > { %2977 = vmatprep.subr.mxu1 %v3646_v25  ;;  %v1117_v4 = vmul.f32 %v3273_v55, %v3753_v21  ;;  %v1334_v19 = vmul.f32 %v3275_v57, %v3267_v39 }
 0x2a1   : > { %v1010_v2 = vmul.f32 %v1006_v56, %v3774_v60  ;;  %2978 = vmatpush3.msra.mxu1 %v3646_v25  ;;  %v1229_v33 = vmul.f32 %v1225_v59, %v3774_v60  ;;  %v1119_v25 = vmul.f32 %v1115_v36, %v3762_v50  ;;  %v1120_v8 = vmul.f32 %v1116_v7, %v3774_v60 }
 0x2a2   : > { %2979 = vmatprep.subr.mxu1 %v3652_v28  ;;  %v1121_v16 = vmul.f32 %v1117_v4, %v3777_v0 }
 0x2a3   : > { %2970 = vmatprep.mubr.msk.f32.mxu1 %vm1016_vm2, %v1010_v2  ;;  %2998 = vmatprep.mubr.msk.f32.mxu0 %vm1016_vm2, %v1229_v33 }
 0x2a4   : > { %2971 = vmatmul.mubr.msk.f32.gmra.mxu1 %vm1016_vm2, %v1011_v58  ;;  %2999 = vmatmul.mubr.msk.f32.gmra.mxu0 %vm1016_vm2, %v1230_v62 }
 0x2a5   : > { %2980 = vmatpush3.msra.mxu1 %v3652_v28  ;;  %2981 = vmatprep.mubr.msk.f32.mxu1 %vm1016_vm2, %v1118_v6  ;;  %v1333_v28 = vmul.f32 %v3269_v42, %v3748_v5  ;;  %v1335_v5 = vmul.f32 %v3273_v55, %v3757_v26  ;;  %v1505_v26 = vld [vmem:[%s4273_s2 + $0x18] sm:$0xff]  ;;  %v1502_v42 = vld [vmem:[%s4273_s2] sm:$0xff] }
 0x2a6   : > { %3001 = vmatprep.subr.mxu1 %v3681_v37 }
 0x2a7   : > { %v1339_v18 = vmul.f32 %v1335_v5, %v3777_v0 }
 0x2a8   : > { %2982 = vmatmul.mubr.msk.f32.vlgmr.msra.gmra.mxu1 %vm1016_vm2, %v1119_v25 }
 0x2a9   : > { %3002 = vmatpush3.msra.mxu1 %v3681_v37  ;;  %2984 = vmatprep.mubr.msk.f32.mxu1 %vm1016_vm2, %v1120_v8  ;;  %v1337_v37 = vmul.f32 %v1333_v28, %v3762_v50 }
 0x2aa   : > { %3003 = vmatprep.subr.mxu1 %v3710_v44 }
 0x2ab   : > { %3004 = vmatpush3.msra.mxu1 %v3710_v44  ;;  %v1338_v44 = vmul.f32 %v1334_v19, %v3774_v60 }
 0x2ac   : > { %3005 = vmatprep.subr.mxu1 %v3683_v38  ;;  %2985 = vmatmul.mubr.msk.f32.gmra.mxu1 %vm1016_vm2, %v1121_v16 }
 0x2ad   : > { %3006 = vmatpush3.msra.mxu1 %v3683_v38  ;;  %3009 = vmatprep.mubr.msk.f32.mxu1 %vm1016_vm2, %v1336_v17  ;;  %v1509_v38 = vld [vmem:[%s4273_s2 + $0x38] sm:$0xff] }
 0x2ae   : > { %3007 = vmatprep.subr.mxu1 %v3692_v40  ;;  %3015 = vmatprep.subr.mxu0 %v1509_v38 }
 0x2af   : > { %3008 = vmatpush3.msra.mxu1 %v3692_v40  ;;  %3016 = vmatpush3.msra.mxu0 %v1509_v38  ;;  %v1508_v40 = vld [vmem:[%s4273_s2 + $0x30] sm:$0xff]  ;;  %v1512_v38 = vsub.s32 1, %v3615_v13 }
 0x2b0   : > { %3010 = vmatmul.mubr.msk.f32.vlgmr.msra.gmra.mxu1 %vm1016_vm2, %v1337_v37  ;;  %3017 = vmatprep.subr.mxu0 %v1508_v40 }
 0x2b1   : > { %3012 = vmatprep.mubr.msk.f32.mxu1 %vm1016_vm2, %v1338_v44  ;;  %3018 = vmatpush3.msra.mxu0 %v1508_v40 }
 0x2b2   : > { %3019 = vmatprep.subr.mxu0 %v1507_v22  ;;  %3037 = vmatprep.subr.mxu1 %v1618_v27 }
 0x2b3   : > { %3020 = vmatpush3.msra.mxu0 %v1507_v22  ;;  %3038 = vmatpush3.msra.mxu1 %v1618_v27  ;;  %v1513_v22 = vrot.slane %v3621_v15, %v1512_v38 }
 0x2b4   : > { %3013 = vmatmul.mubr.msk.f32.gmra.mxu1 %vm1016_vm2, %v1339_v18  ;;  %3021 = vmatprep.subr.mxu0 %v1506_v23 }
 0x2b5   : > { %3053 = vmatprep.mubr.msk.f32.mxu1 %vm349_vm0, %v3580_v3  ;;  %3022 = vmatpush3.msra.mxu0 %v1506_v23 }
 0x2b6   : > { %3023 = vmatprep.subr.mxu0 %v1505_v26  ;;  %3039 = vmatprep.subr.mxu1 %v1617_v30 }
 0x2b7   : > { %3024 = vmatpush3.msra.mxu0 %v1505_v26  ;;  %3040 = vmatpush3.msra.mxu1 %v1617_v30 }
 0x2b8   : > { %3025 = vmatprep.subr.mxu0 %v1504_v29  ;;  %3041 = vmatprep.subr.mxu1 %v1616_v35 }
 0x2b9   : > { %3026 = vmatpush3.msra.mxu0 %v1504_v29  ;;  %3042 = vmatpush3.msra.mxu1 %v1616_v35 }
 0x2ba   : > { %3027 = vmatprep.subr.mxu0 %v1503_v34  ;;  %3043 = vmatprep.subr.mxu1 %v1615_v43 }
 0x2bb   : > { %3028 = vmatpush3.msra.mxu0 %v1503_v34  ;;  %3044 = vmatpush3.msra.mxu1 %v1615_v43 }
 0x2bc   : > { %3029 = vmatprep.subr.mxu0 %v1502_v42  ;;  %3045 = vmatprep.subr.mxu1 %v1614_v47 }
 0x2bd   : > { %3030 = vmatpush3.msra.mxu0 %v1502_v42  ;;  %3046 = vmatpush3.msra.mxu1 %v1614_v47 }
 0x2be   : > { %3047 = vmatprep.subr.mxu1 %v1613_v49 }
 0x2bf   : > { %3048 = vmatpush3.msra.mxu1 %v1613_v49 }
 0x2c0   : > { %3049 = vmatprep.subr.mxu1 %v1612_v52 }
 0x2c1   : > { %3050 = vmatpush3.msra.mxu1 %v1612_v52 }
 0x2c2   : > { %3051 = vmatprep.subr.mxu1 %v1611_v54 }
 0x2c3   : > { %3052 = vmatpush3.msra.mxu1 %v1611_v54 }
 0x2c4   : > { %3054 = vmatmul.mubr.msk.f32.vlgmr.msra.gmra.mxu1 %vm349_vm0, %v3600_v9 }
 0x2c5   : > { %3056 = vmatprep.mubr.msk.f32.mxu1 %vm349_vm0, %v3603_v10 }
 0x2c8   : > { %3057 = vmatmul.mubr.msk.f32.gmra.mxu1 %vm349_vm0, %v3610_v11 }
 0x2c9   : > { %3081 = vmatprep.mubr.msk.f32.mxu1 %vm1016_vm2, %v3760_v45 }
 0x35c   : > { %v3828_v20 = vpop.f32.mrf.mxu1  ;;  %v2997_v21 = vpop.f32.mrf.mxu0 }
 0x35d   : > { %1463 = vrot.lane.b32.xlu1 %v2997_v21, %s3424_s8 }
 0x35e   : > { %v1313_v3 = vpop.f32.mrf.mxu0  ;;  %v3838_v24 = vpop.f32.mrf.mxu1 }
 0x35f   : > { %1461 = vrot.lane.b32.xlu0 %v1313_v3, %s3424_s8 }
 0x364   : > { %v3852_v31 = vpop.f32.mrf.mxu1  ;;  %v3000_v32 = vpop.f32.mrf.mxu0 }
 0x365   : > { %1467 = vrot.lane.b32.xlu1 %v3000_v32, %s3424_s8 }
 0x366   : > { %v1105_v39 = vpop.f32.mrf.mxu1  ;;  %v1323_v41 = vpop.f32.mrf.mxu0 }
 0x367   : > { %1465 = vrot.lane.b32.xlu0 %v1323_v41, %s3424_s8  ;;  %s3430_s8 = smov 65  }
 0x368   : > { %v2983_v46 = vpop.f32.mrf.mxu1 }
 0x369   : > { %1447 = vrot.lane.b32.xlu1 %v2983_v46, %s3426_s14 }
 0x36a   : > { %v1204_v48 = vpop.f32.mrf.mxu1 }
 0x36b   : > { %1445 = vrot.lane.b32.xlu0 %v1204_v48, %s3426_s14 }
 0x36c   : > { %v2986_v51 = vpop.f32.mrf.mxu1 }
 0x36d   : > { %1451 = vrot.lane.b32.xlu1 %v2986_v51, %s3426_s14 }
 0x36e   : > { %v1214_v53 = vpop.f32.mrf.mxu1 }
 0x36f   : > { %1449 = vrot.lane.b32.xlu0 %v1214_v53, %s3426_s14 }
 0x370   : > { %v3011_v55 = vpop.f32.mrf.mxu1 }
 0x371   : > { %1479 = vrot.lane.b32.xlu1 %v3011_v55, %s3422_s23 }
 0x372   : > { %v1422_v57 = vpop.f32.mrf.mxu1 }
 0x373   : > { %1477 = vrot.lane.b32.xlu0 %v1422_v57, %s3422_s23 }
 0x374   : > { %v3014_v61 = vpop.f32.mrf.mxu1 }
 0x375   : > { %1483 = vrot.lane.b32.xlu1 %v3014_v61, %s3422_s23 }
 0x376   : > { %v1432_v63 = vpop.f32.mrf.mxu1 }
 0x377   : > { %1481 = vrot.lane.b32.xlu0 %v1432_v63, %s3422_s23 }
 0x384   : > { %v3055_v18 = vpop.f32.mrf.mxu1 }
 0x386   : > { %v1689_v21 = vpop.f32.mrf.mxu1 }
 0x388   : > { %v3058_v27 = vpop.f32.mrf.mxu1 }
 0x38a   : > { %v1699_v32 = vpop.f32.mrf.mxu1 }
 0x3cf   : > { %v1464_v56 = vpop.permute.xlu1 %1463 }
 0x3d1   : > { %v1462_v59 = vpop.permute.xlu0 %1461 }
 0x3d7   : > { %v1468_v1 = vpop.permute.xlu1 %1467 }
 0x3d9   : > { %v1466_v2 = vpop.permute.xlu0 %1465 }
 0x3db   : > { %v1448_v9 = vpop.permute.xlu1 %1447 }
 0x3dc   : > { %v1490_v36 = vsel %vm467_vm1, %v3828_v20, %v1448_v9 }
 0x3dd   : > { %v1446_v33 = vpop.permute.xlu0 %1445  ;;  %v1494_v4 = vsel %vm1016_vm2, %v1490_v36, %v1464_v56 }
 0x3de   : > { %v1489_v10 = vsel %vm467_vm1, %v3838_v24, %v1446_v33  ;;  %v1621_v24 = vsub.s32 2, %v3615_v13 }
 0x3df   : > { %v1452_v58 = vpop.permute.xlu1 %1451  ;;  %v1493_v11 = vsel %vm1016_vm2, %v1489_v10, %v1462_v59 }
 0x3e0   : > { %v1492_v14 = vsel %vm467_vm1, %v3852_v31, %v1452_v58  ;;  %v1622_v31 = vrot.slane %v3621_v15, %v1621_v24 }
 0x3e1   : > { %v1450_v62 = vpop.permute.xlu0 %1449  ;;  %v1496_v37 = vsel %vm1016_vm2, %v1492_v14, %v1468_v1 }
 0x3e2   : > { %v1491_v25 = vsel %vm467_vm1, %v1105_v39, %v1450_v62  ;;  %v3927_v35 = vadd.f32 %v3058_v27, %v1622_v31  ;;  %v3930_v13 = vadd.f32 %v1699_v32, %v1622_v31  ;;  %v3939_v15 = vadd.f32 %v3055_v18, %v1622_v31 }
 0x3e3   : > { %v1480_v6 = vpop.permute.xlu1 %1479  ;;  %v1495_v17 = vsel %vm1016_vm2, %v1491_v25, %v1466_v2  ;;  %v3943_v39 = vadd.f32 %v1689_v21, %v1622_v31 }
 0x3e4   : > { %v1499_v28 = vsel %vm1497_vm3, %v1494_v4, %v1480_v6 }
 0x3e5   : > { %v1478_v7 = vpop.permute.xlu0 %1477 }
 0x3e6   : > { %v1498_v8 = vsel %vm1497_vm3, %v1493_v11, %v1478_v7 }
 0x3e7   : > { %3031 = vmatprep.mubr.msk.f32.mxu0 %vm349_vm0, %v1498_v8  ;;  %v1484_v16 = vpop.permute.xlu1 %1483 }
 0x3e8   : > { %3032 = vmatmul.mubr.msk.f32.vlgmr.msra.gmra.mxu0 %vm349_vm0, %v1499_v28  ;;  %v1501_v44 = vsel %vm1497_vm3, %v1496_v37, %v1484_v16 }
 0x3e9   : > { %v1482_v19 = vpop.permute.xlu0 %1481 }
 0x3ea   : > { %v1500_v5 = vsel %vm1497_vm3, %v1495_v17, %v1482_v19 }
 0x3eb   : > { %3034 = vmatprep.mubr.msk.f32.mxu0 %vm349_vm0, %v1500_v5 }
 0x3ec   : > { %3035 = vmatmul.mubr.msk.f32.gmra.mxu0 %vm349_vm0, %v1501_v44 }
 0x3ed   : > { %3067 = vmatprep.mubr.msk.f32.mxu0 %vm1016_vm2, %v3760_v45 }
 0x4a8   : > { %v3033_v40 = vpop.f32.mrf.mxu0 }
 0x4a9   : > { %v1598_v30 = vadd.f32 %v3033_v40, %v1513_v22 }
 0x4aa   : > { %v1592_v20 = vpop.f32.mrf.mxu0 }
 0x4ab   : > { %v3925_v34 = vadd.f32 %v1592_v20, %v1513_v22 }
 0x4ac   : > { %v3036_v3 = vpop.f32.mrf.mxu0 }
 0x4ad   : > { %v3919_v23 = vadd.f32 %v3036_v3, %v1513_v22 }
 0x4ae   : > { %v1602_v26 = vpop.f32.mrf.mxu0 }
 0x4af   : > { %v1603_v29 = vadd.f32 %v1602_v26, %v1513_v22  ;;  %3059 = vmatprep.subr.mxu0 %v3919_v23 }
 0x4b0   : > { %3060 = vmatpush3.msra.mxu0 %v3919_v23 }
 0x4b1   : > { %3061 = vmatprep.subr.mxu0 %v1603_v29 }
 0x4b2   : > { %3062 = vmatpush3.msra.mxu0 %v1603_v29 }
 0x4b3   : > { %3063 = vmatprep.subr.mxu0 %v1598_v30 }
 0x4b4   : > { %3064 = vmatpush3.msra.mxu0 %v1598_v30 }
 0x4b5   : > { %3065 = vmatprep.subr.mxu0 %v3925_v34 }
 0x4b6   : > { %3066 = vmatpush3.msra.mxu0 %v3925_v34 }
 0x4b7   : > { %3068 = vmatmul.mubr.msk.f32.vlgmr.msra.gmra.mxu0 %vm1016_vm2, %v3762_v50  ;;  %3087 = vmatprep.subr.mxu0 %v3927_v35 }
 0x4b8   : > { %3088 = vmatpush3.msra.mxu0 %v3927_v35  ;;  %3070 = vmatprep.mubr.msk.f32.mxu0 %vm1016_vm2, %v3774_v60 }
 0x4b9   : > { %3089 = vmatprep.subr.mxu0 %v3930_v13 }
 0x4ba   : > { %3090 = vmatpush3.msra.mxu0 %v3930_v13 }
 0x4bb   : > { %3071 = vmatmul.mubr.msk.f32.gmra.mxu0 %vm1016_vm2, %v3777_v0  ;;  %3091 = vmatprep.subr.mxu0 %v3939_v15 }
 0x4bc   : > { %3092 = vmatpush3.msra.mxu0 %v3939_v15  ;;  %3095 = vmatprep.mubr.msk.f32.mxu0 %vm1016_vm2, %v3760_v45 }
 0x4bd   : > { %3093 = vmatprep.subr.mxu0 %v3943_v39 }
 0x4be   : > { %3094 = vmatpush3.msra.mxu0 %v3943_v39 }
 0x4bf   : > { %3096 = vmatmul.mubr.msk.f32.vlgmr.msra.gmra.mxu0 %vm1016_vm2, %v3762_v50 }
 0x4c0   : > { %3098 = vmatprep.mubr.msk.f32.mxu0 %vm1016_vm2, %v3774_v60 }
 0x4c3   : > { %3099 = vmatmul.mubr.msk.f32.gmra.mxu0 %vm1016_vm2, %v3777_v0 }
 0x577   : > { %v3069_v41 = vpop.f32.mrf.mxu0 }
 0x578   : > { %v1808_v51 = vsel %vm349_vm0, %v3069_v41, 0.0 }
 0x579   : > { %v1786_v42 = vpop.f32.mrf.mxu0 }
 0x57a   : > { %v1805_v54 = vsel %vm349_vm0, %v1786_v42, 0.0 }
 0x57b   : > { %v3072_v43 = vpop.f32.mrf.mxu0 }
 0x57c   : > { %v1814_v46 = vsel %vm349_vm0, %v3072_v43, 0.0 }
 0x57d   : > { %1815 = vadd.xlane.f32.xlu0 %v1814_v46  ;;  %v1796_v47 = vpop.f32.mrf.mxu0 }
 0x57e   : > { %v1811_v48 = vsel %vm349_vm0, %v1796_v47, 0.0 }
 0x57f   : > { %1812 = vadd.xlane.f32.xlu1 %v1811_v48  ;;  %v3097_v49 = vpop.f32.mrf.mxu0 }
 0x580   : > { %v2042_v61 = vsel %vm349_vm0, %v3097_v49, 0.0 }
 0x581   : > { %1809 = vadd.xlane.f32.xlu0 %v1808_v51  ;;  %v2020_v52 = vpop.f32.mrf.mxu0 }
 0x582   : > { %v2039_v56 = vsel %vm349_vm0, %v2020_v52, 0.0 }
 0x583   : > { %v3100_v53 = vpop.f32.mrf.mxu0 }
 0x584   : > { %v2048_v55 = vsel %vm349_vm0, %v3100_v53, 0.0 }
 0x585   : > { %1806 = vadd.xlane.f32.xlu0 %v1805_v54  ;;  %2049 = vadd.xlane.f32.xlu1 %v2048_v55  ;;  %v2030_v57 = vpop.f32.mrf.mxu0 }
 0x586   : > { %v2045_v63 = vsel %vm349_vm0, %v2030_v57, 0.0 }
 0x589   : > { %2043 = vadd.xlane.f32.xlu1 %v2042_v61  ;;  %2046 = vadd.xlane.f32.xlu0 %v2045_v63 }
 0x58d   : > { %2040 = vadd.xlane.f32.xlu0 %v2039_v56 }
 0x606   : > { %v1816_v59 = vpop.xlane.xlu0 %1815 }
 0x607   : > { %v1820_v1 = vmul.f32 0.001953125, %v1816_v59 }
 0x608   : > { %v1813_v2 = vpop.xlane.xlu1 %1812 }
 0x609   : > { %v3968_v9 = vsub.f32 %v3919_v23, %v1820_v1  ;;  %v1819_v33 = vmul.f32 0.001953125, %v1813_v2 }
 0x60a   : > { %v1810_v58 = vpop.xlane.xlu0 %1809 }
 0x60b   : > { %v3970_v62 = vsub.f32 %v1603_v29, %v1819_v33  ;;  %v1818_v10 = vmul.f32 0.001953125, %v1810_v58  ;;  %v1828_v36 = vmul.f32 %v3968_v9, %v3968_v9 }
 0x60d   : > { %v3974_v6 = vsub.f32 %v1598_v30, %v1818_v10  ;;  %3073 = vmatprep.subr.mxu1 %v1828_v36  ;;  %v1827_v11 = vmul.f32 %v3970_v62, %v3970_v62 }
 0x60e   : > { %3074 = vmatpush3.msra.mxu1 %v1828_v36  ;;  %v1807_v7 = vpop.xlane.xlu0 %1806  ;;  %v2050_v25 = vpop.xlane.xlu1 %2049 }
 0x60f   : > { %v1817_v4 = vmul.f32 0.001953125, %v1807_v7  ;;  %v2054_v8 = vmul.f32 0.001953125, %v2050_v25  ;;  %3075 = vmatprep.subr.mxu1 %v1827_v11  ;;  %v1826_v14 = vmul.f32 %v3974_v6, %v3974_v6 }
 0x610   : > { %3076 = vmatpush3.msra.mxu1 %v1827_v11 }
 0x611   : > { %v3981_v28 = vsub.f32 %v3925_v34, %v1817_v4  ;;  %v3984_v16 = vsub.f32 %v3927_v35, %v2054_v8  ;;  %3077 = vmatprep.subr.mxu1 %v1826_v14 }
 0x612   : > { %3078 = vmatpush3.msra.mxu1 %v1826_v14  ;;  %v2044_v17 = vpop.xlane.xlu1 %2043  ;;  %v2047_v19 = vpop.xlane.xlu0 %2046  ;;  %v321_v14 = vld [vmem:[%s4275_s4 + $0x18] sm:$0xff] }
 0x613   : > { %v2052_v37 = vmul.f32 0.001953125, %v2044_v17  ;;  %v2053_v5 = vmul.f32 0.001953125, %v2047_v19  ;;  %v1825_v44 = vmul.f32 %v3981_v28, %v3981_v28  ;;  %v2062_v40 = vmul.f32 %v3984_v16, %v3984_v16 }
 0x615   : > { %v3989_v18 = vsub.f32 %v3939_v15, %v2052_v37  ;;  %v3992_v38 = vsub.f32 %v3930_v13, %v2053_v5  ;;  %3079 = vmatprep.subr.mxu1 %v1825_v44  ;;  %v320_v5 = vld [vmem:[%s4275_s4 + $0x10] sm:$0xff] }
 0x616   : > { %3080 = vmatpush3.msra.mxu1 %v1825_v44  ;;  %v2041_v20 = vpop.xlane.xlu0 %2040  ;;  %v325_v44 = vld [vmem:[%s4275_s4 + $0x38] sm:$0xff] }
 0x617   : > { %v2051_v21 = vmul.f32 0.001953125, %v2041_v20  ;;  %3082 = vmatmul.mubr.msk.f32.vlgmr.msra.gmra.mxu1 %vm1016_vm2, %v3762_v50  ;;  %3101 = vmatprep.subr.mxu1 %v2062_v40  ;;  %v2061_v22 = vmul.f32 %v3992_v38, %v3992_v38  ;;  %v2060_v23 = vmul.f32 %v3989_v18, %v3989_v18 }
 0x618   : > { %3102 = vmatpush3.msra.mxu1 %v2062_v40  ;;  %3084 = vmatprep.mubr.msk.f32.mxu1 %vm1016_vm2, %v3774_v60 }
 0x619   : > { %v4003_v3 = vsub.f32 %v3943_v39, %v2051_v21  ;;  %3103 = vmatprep.subr.mxu1 %v2061_v22  ;;  %v329_v21 = vld [vmem:[%s4275_s4 + $0x58] sm:$0xff] }
 0x61a   : > { %3104 = vmatpush3.msra.mxu1 %v2061_v22 }
 0x61b   : > { %3085 = vmatmul.mubr.msk.f32.gmra.mxu1 %vm1016_vm2, %v3777_v0  ;;  %3105 = vmatprep.subr.mxu1 %v2060_v23  ;;  %v2059_v24 = vmul.f32 %v4003_v3, %v4003_v3 }
 0x61c   : > { %3106 = vmatpush3.msra.mxu1 %v2060_v23  ;;  %3109 = vmatprep.mubr.msk.f32.mxu1 %vm1016_vm2, %v3760_v45  ;;  %v324_v23 = vld [vmem:[%s4275_s4 + $0x30] sm:$0xff] }
 0x61d   : > { %3107 = vmatprep.subr.mxu1 %v2059_v24 }
 0x61e   : > { %3108 = vmatpush3.msra.mxu1 %v2059_v24 }
 0x61f   : > { %3110 = vmatmul.mubr.msk.f32.vlgmr.msra.gmra.mxu1 %vm1016_vm2, %v3762_v50 }
 0x620   : > { %3112 = vmatprep.mubr.msk.f32.mxu1 %vm1016_vm2, %v3774_v60 }
 0x623   : > { %3113 = vmatmul.mubr.msk.f32.gmra.mxu1 %vm1016_vm2, %v3777_v0 }
 0x6d7   : > { %v3083_v26 = vpop.f32.mrf.mxu1 }
 0x6d8   : > { %v1917_v27 = vsel %vm349_vm0, %v3083_v26, 0.0 }
 0x6d9   : > { %v1895_v29 = vpop.f32.mrf.mxu1  ;;  %1918 = vadd.xlane.f32.xlu0 %v1917_v27 }
 0x6da   : > { %v1914_v60 = vsel %vm349_vm0, %v1895_v29, 0.0 }
 0x6db   : > { %v3086_v30 = vpop.f32.mrf.mxu1 }
 0x6dc   : > { %v1923_v31 = vsel %vm349_vm0, %v3086_v30, 0.0 }
 0x6dd   : > { %v1905_v45 = vpop.f32.mrf.mxu1  ;;  %1924 = vadd.xlane.f32.xlu1 %v1923_v31 }
 0x6de   : > { %v1920_v32 = vsel %vm349_vm0, %v1905_v45, 0.0 }
 0x6df   : > { %1921 = vadd.xlane.f32.xlu0 %v1920_v32  ;;  %v3111_v50 = vpop.f32.mrf.mxu1  ;;  %v328_v32 = vld [vmem:[%s4275_s4 + $0x50] sm:$0xff] }
 0x6e0   : > { %v2151_v41 = vsel %vm349_vm0, %v3111_v50, 0.0  ;;  %v323_v50 = vld [vmem:[%s4275_s4 + $0x28] sm:$0xff] }
 0x6e1   : > { %v2129_v34 = vpop.f32.mrf.mxu1 }
 0x6e2   : > { %v2148_v15 = vsel %vm349_vm0, %v2129_v34, 0.0 }
 0x6e3   : > { %1915 = vadd.xlane.f32.xlu0 %v1914_v60  ;;  %v3114_v35 = vpop.f32.mrf.mxu1  ;;  %v3292_v60 = vld [vmem:[%s3568_s17 + $0x18] sm:$0xff] }
 0x6e4   : > { %v2157_v0 = vsel %vm349_vm0, %v3114_v35, 0.0 }
 0x6e5   : > { %2158 = vadd.xlane.f32.xlu1 %v2157_v0  ;;  %v2139_v13 = vpop.f32.mrf.mxu1 }
 0x6e6   : > { %v2154_v39 = vsel %vm349_vm0, %v2139_v13, 0.0  ;;  %v318_v13 = vld [vmem:[%s4275_s4] sm:$0xff] }
 0x6e7   : > { %2149 = vadd.xlane.f32.xlu0 %v2148_v15  ;;  %v332_v15 = vld [vmem:[%s4275_s4 + $0x70] sm:$0xff] }
 0x6e9   : > { %2155 = vadd.xlane.f32.xlu1 %v2154_v39 }
 0x6ed   : > { %2152 = vadd.xlane.f32.xlu1 %v2151_v41 }
 0x762   : > { %v1919_v42 = vpop.xlane.xlu0 %1918 }
 0x763   : > { %v1927_v47 = vmul.f32 0.001953125, %v1919_v42 }
 0x765   : > { %v1931_v53 = vadd.f32 1e-05, %v1927_v47 }
 0x766   : > { %v1925_v43 = vpop.xlane.xlu1 %1924 }
 0x767   : > { %v1929_v46 = vmul.f32 0.001953125, %v1925_v43 }
 0x768   : > { %v1922_v48 = vpop.xlane.xlu0 %1921 }
 0x769   : > { %v1933_v49 = vadd.f32 1e-05, %v1929_v46  ;;  %v1928_v51 = vmul.f32 0.001953125, %v1922_v48  ;;  %v327_v46 = vld [vmem:[%s4275_s4 + $0x48] sm:$0xff] }
 0x76b   : > { %3276 = vrsqrt.f32 %v1933_v49  ;;  %v1932_v52 = vadd.f32 1e-05, %v1928_v51 }
 0x76c   : > { %v1916_v54 = vpop.xlane.xlu0 %1915 }
 0x76d   : > { %3278 = vrsqrt.f32 %v1932_v52  ;;  %v1926_v55 = vmul.f32 0.001953125, %v1916_v54  ;;  %v322_v52 = vld [vmem:[%s4275_s4 + $0x20] sm:$0xff] }
 0x76e   : > { %v2159_v57 = vpop.xlane.xlu1 %2158  ;;  %3280 = vrsqrt.f32 %v1931_v53  ;;  %v331_v53 = vld [vmem:[%s4275_s4 + $0x68] sm:$0xff] }
 0x76f   : > { %v2163_v61 = vmul.f32 0.001953125, %v2159_v57  ;;  %v1930_v56 = vadd.f32 1e-05, %v1926_v55 }
 0x770   : > { %v2150_v63 = vpop.xlane.xlu0 %2149 }
 0x771   : > { %v2167_v59 = vadd.f32 1e-05, %v2163_v61  ;;  %v2160_v1 = vmul.f32 0.001953125, %v2150_v63  ;;  %v3294_v63 = vld [vmem:[%s3568_s17 + $0x8] sm:$0xff] }
 0x772   : > { %v2156_v2 = vpop.xlane.xlu1 %2155 }
 0x773   : > { %3282 = vrsqrt.f32 %v2167_v59  ;;  %v2164_v33 = vadd.f32 1e-05, %v2160_v1  ;;  %v2162_v58 = vmul.f32 0.001953125, %v2156_v2 }
 0x774   : > { %3284 = vrsqrt.f32 %v1930_v56 }
 0x775   : > { %v2166_v10 = vadd.f32 1e-05, %v2162_v58  ;;  %3286 = vrsqrt.f32 %v2164_v33  ;;  %v3295_v33 = vld [vmem:[%s3568_s17] sm:$0xff] }
 0x776   : > { %v2153_v36 = vpop.xlane.xlu1 %2152 }
 0x777   : > { %3288 = vrsqrt.f32 %v2166_v10  ;;  %v2161_v11 = vmul.f32 0.001953125, %v2153_v36 }
 0x778   : > { %v3277_v7 = vpop.eup %3276 }
 0x779   : > { %v1941_v25 = vmul.f32 %v3277_v7, %v3968_v9  ;;  %v2165_v4 = vadd.f32 1e-05, %v2161_v11 }
 0x77a   : > { %v3279_v8 = vpop.eup %3278 }
 0x77b   : > { %3290 = vrsqrt.f32 %v2165_v4  ;;  %v1940_v17 = vmul.f32 %v3279_v8, %v3970_v62  ;;  %v3281_v19 = vpop.eup %3280  ;;  %v1945_v37 = vmul.f32 %v1941_v25, %v321_v14  ;;  %v319_v62 = vld [vmem:[%s4275_s4 + $0x8] sm:$0xff] }
 0x77c   : > { %v1939_v40 = vmul.f32 %v3281_v19, %v3974_v6  ;;  %v333_v6 = vld [vmem:[%s4275_s4 + $0x78] sm:$0xff] }
 0x77d   : > { %v1944_v20 = vmul.f32 %v1940_v17, %v320_v5  ;;  %v1949_v22 = vadd.f32 %v1945_v37, %v325_v44 }
 0x77e   : > { %v1943_v31 = vmul.f32 %v1939_v40, %v319_v62  ;;  %v335_v62 = vld [vmem:[#allocation2] sm:$0xff] }
 0x77f   : > { %v1948_v45 = vadd.f32 %v1944_v20, %v324_v23  ;;  %v1953_v35 = vadd.f32 %v3292_v60, %v1949_v22  ;;  %3139 = vmatprep.mubr.msk.f32.mxu0 %vm2267_vm5, %v335_v62  ;;  %v3431_v22 = vmov 96   ;;  %v336_v23 = vld [vmem:[#allocation2 + $0x8] sm:$0xff] }
 0x780   : > { %v3283_v9 = vpop.eup %3282  ;;  %v1947_v43 = vadd.f32 %v1943_v31, %v323_v50  ;;  %3234 = vset.pattern.permute.xlu0 %v3431_v22  ;;  %3235 = vset.pattern.permute.xlu1 %v3431_v22 }
 0x781   : > { %v2175_v24 = vmul.f32 %v3283_v9, %v3984_v16  ;;  %v3285_v26 = vpop.eup %3284 }
 0x782   : > { %v3287_v27 = vpop.eup %3286  ;;  %v1938_v16 = vmul.f32 %v3285_v26, %v3981_v28  ;;  %v1951_v56 = vadd.f32 %v3294_v63, %v1947_v43 }
 0x783   : > { %v2179_v29 = vmul.f32 %v2175_v24, %v329_v21  ;;  %v2172_v39 = vmul.f32 %v3287_v27, %v4003_v3  ;;  %v3293_v3 = vld [vmem:[%s3568_s17 + $0x10] sm:$0xff]  ;;  %s3429_s17 = smov 127   ;;  %v4133_v24 = vand.u32 127, %v447_v12 }
 0x784   : > { %v3289_v30 = vpop.eup %3288  ;;  %v1942_v47 = vmul.f32 %v1938_v16, %v318_v13  ;;  %v1952_v49 = vadd.f32 %v3293_v3, %v1948_v45 }
 0x785   : > { %v2174_v34 = vmul.f32 %v3289_v30, %v3992_v38  ;;  %v2183_v0 = vadd.f32 %v2179_v29, %v333_v6  ;;  %v326_v38 = vld [vmem:[%s4275_s4 + $0x40] sm:$0xff]  ;;  %vm2191_vm6 = vcmp.le.s32.totalorder %v4133_v24, 62  ;;  %vm2190_vm7 = vcmp.ge.s32.totalorder %v4133_v24, 1 }
 0x786   : > { %v2176_v54 = vmul.f32 %v2172_v39, %v326_v38  ;;  %v1946_v61 = vadd.f32 %v1942_v47, %v322_v52  ;;  %v339_v52 = vld [vmem:[#allocation2 + $0x20] sm:$0xff] }
 0x787   : > { %v2178_v41 = vmul.f32 %v2174_v34, %v328_v32  ;;  %v4068_v42 = vadd.f32 %v2183_v0, %v1953_v35 }
 0x788   : > { %v3291_v28 = vpop.eup %3290  ;;  %v1950_v58 = vadd.f32 %v3295_v33, %v1946_v61 }
 0x789   : > { %v2173_v48 = vmul.f32 %v3291_v28, %v3989_v18  ;;  %2202 = vrot.lane.b32.xlu1 %v4068_v42, %s3423_s29  ;;  %v2182_v51 = vadd.f32 %v2178_v41, %v332_v15  ;;  %v330_v18 = vld [vmem:[%s4275_s4 + $0x60] sm:$0xff]  ;;  %v337_v41 = vld [vmem:[#allocation2 + $0x10] sm:$0xff] }
 0x78a   : > { %v2180_v2 = vadd.f32 %v2176_v54, %v330_v18  ;;  %3154 = vmatprep.mubr.msk.f32.mxu1 %vm1497_vm3, %v337_v41 }
 0x78b   : > { %v2177_v55 = vmul.f32 %v2173_v48, %v327_v46  ;;  %v4086_v57 = vadd.f32 %v2182_v51, %v1952_v49  ;;  %v338_v51 = vld [vmem:[#allocation2 + $0x18] sm:$0xff] }
 0x78c   : > { %v4099_v10 = vadd.f32 %v2180_v2, %v1950_v58 }
 0x78d   : > { %2199 = vrot.lane.b32.xlu0 %v4086_v57, %s3423_s29  ;;  %v2181_v59 = vadd.f32 %v2177_v55, %v331_v53  ;;  %v340_v53 = vld [vmem:[#allocation2 + $0x28] sm:$0xff] }
 0x78f   : > { %v4094_v1 = vadd.f32 %v2181_v59, %v1951_v56 }
 0x791   : > { %2196 = vrot.lane.b32.xlu1 %v4094_v1, %s3423_s29 }
 0x795   : > { %2193 = vrot.lane.b32.xlu1 %v4099_v10, %s3423_s29 }
 0x7fb   : > { %v2203_v36 = vpop.permute.xlu1 %2202 }
 0x7fc   : > { %v2204_v11 = vsel %vm2192_vm4, %v2203_v36, %v4068_v42 }
 0x7fd   : > { %2211 = vrot.lane.b32.xlu0 %v2204_v11, %s3423_s29 }
 0x7ff   : > { %v2200_v7 = vpop.permute.xlu0 %2199 }
 0x800   : > { %v2201_v25 = vsel %vm2192_vm4, %v2200_v7, %v4086_v57 }
 0x801   : > { %2209 = vrot.lane.b32.xlu1 %v2201_v25, %s3423_s29 }
 0x803   : > { %v2197_v4 = vpop.permute.xlu1 %2196 }
 0x804   : > { %v2198_v8 = vsel %vm2192_vm4, %v2197_v4, %v4094_v1 }
 0x805   : > { %2207 = vrot.lane.b32.xlu0 %v2198_v8, %s3423_s29 }
 0x807   : > { %v2194_v14 = vpop.permute.xlu1 %2193 }
 0x808   : > { %v2195_v17 = vsel %vm2192_vm4, %v2194_v14, %v4099_v10 }
 0x809   : > { %2205 = vrot.lane.b32.xlu1 %v2195_v17, %s3423_s29 }
 0x86f   : > { %v2212_v19 = vpop.permute.xlu0 %2211 }
 0x870   : > { %v2216_v37 = vsel %vm2192_vm4, %v2212_v19, %v4068_v42 }
 0x871   : > { %2247 = vrot.lane.b32.xlu0 %v2216_v37, %s3429_s17 }
 0x873   : > { %v2210_v5 = vpop.permute.xlu1 %2209 }
 0x874   : > { %v2215_v44 = vsel %vm2192_vm4, %v2210_v5, %v4086_v57 }
 0x875   : > { %2245 = vrot.lane.b32.xlu1 %v2215_v44, %s3429_s17 }
 0x877   : > { %v2208_v9 = vpop.permute.xlu0 %2207 }
 0x878   : > { %v2214_v40 = vsel %vm2192_vm4, %v2208_v9, %v4094_v1 }
 0x879   : > { %2243 = vrot.lane.b32.xlu0 %v2214_v40, %s3429_s17 }
 0x87b   : > { %v2206_v20 = vpop.permute.xlu1 %2205 }
 0x87c   : > { %v2213_v21 = vsel %vm2192_vm4, %v2206_v20, %v4099_v10 }
 0x87d   : > { %2241 = vrot.lane.b32.xlu1 %v2213_v21, %s3429_s17  ;;  %2229 = vrot.lane.b32.xlu0 %v2216_v37, %s3430_s8 }
 0x881   : > { %2227 = vrot.lane.b32.xlu1 %v2215_v44, %s3430_s8  ;;  %2225 = vrot.lane.b32.xlu0 %v2214_v40, %s3430_s8 }
 0x885   : > { %2223 = vrot.lane.b32.xlu1 %v2213_v21, %s3430_s8  ;;  %2264 = vperm.xlu0 %3234, %v336_v23  }
 0x889   : > { %2259 = vperm.xlu1 %3235, %v335_v62  }
 0x8e3   : > { %v2248_v26 = vpop.permute.xlu0 %2247 }
 0x8e4   : > { %3115 = vmatprep.subr.msk.mxu0 %vm2191_vm6, %v2248_v26 }
 0x8e5   : > { %3116 = vmatpush3.msk.msra.mxu0 %vm2191_vm6, %v2248_v26 }
 0x8e7   : > { %v2246_v6 = vpop.permute.xlu1 %2245 }
 0x8e8   : > { %3117 = vmatprep.subr.msk.mxu0 %vm2191_vm6, %v2246_v6 }
 0x8e9   : > { %3118 = vmatpush3.msk.msra.mxu0 %vm2191_vm6, %v2246_v6 }
 0x8eb   : > { %v2244_v27 = vpop.permute.xlu0 %2243 }
 0x8ec   : > { %3119 = vmatprep.subr.msk.mxu0 %vm2191_vm6, %v2244_v27 }
 0x8ed   : > { %3120 = vmatpush3.msk.msra.mxu0 %vm2191_vm6, %v2244_v27 }
 0x8ef   : > { %v2242_v12 = vpop.permute.xlu1 %2241  ;;  %v2230_v29 = vpop.permute.xlu0 %2229 }
 0x8f0   : > { %3121 = vmatprep.subr.msk.mxu0 %vm2191_vm6, %v2242_v12 }
 0x8f1   : > { %3122 = vmatpush3.msk.msra.mxu0 %vm2191_vm6, %v2242_v12 }
 0x8f2   : > { %3123 = vmatprep.subr.mxu0 %v4068_v42 }
 0x8f3   : > { %3124 = vmatpush3.msra.mxu0 %v4068_v42  ;;  %v2228_v30 = vpop.permute.xlu1 %2227  ;;  %v2226_v31 = vpop.permute.xlu0 %2225 }
 0x8f4   : > { %3125 = vmatprep.subr.mxu0 %v4086_v57 }
 0x8f5   : > { %3126 = vmatpush3.msra.mxu0 %v4086_v57 }
 0x8f6   : > { %3127 = vmatprep.subr.mxu0 %v4094_v1 }
 0x8f7   : > { %3128 = vmatpush3.msra.mxu0 %v4094_v1  ;;  %v2224_v45 = vpop.permute.xlu1 %2223 }
 0x8f8   : > { %3129 = vmatprep.subr.mxu0 %v4099_v10 }
 0x8f9   : > { %3130 = vmatpush3.msra.mxu0 %v4099_v10 }
 0x8fa   : > { %3131 = vmatprep.subr.msk.mxu0 %vm2190_vm7, %v2230_v29 }
 0x8fb   : > { %3132 = vmatpush3.msk.msra.mxu0 %vm2190_vm7, %v2230_v29 }
 0x8fc   : > { %3133 = vmatprep.subr.msk.mxu0 %vm2190_vm7, %v2228_v30 }
 0x8fd   : > { %3134 = vmatpush3.msk.msra.mxu0 %vm2190_vm7, %v2228_v30 }
 0x8fe   : > { %3135 = vmatprep.subr.msk.mxu0 %vm2190_vm7, %v2226_v31 }
 0x8ff   : > { %3136 = vmatpush3.msk.msra.mxu0 %vm2190_vm7, %v2226_v31 }
 0x900   : > { %3137 = vmatprep.subr.msk.mxu0 %vm2190_vm7, %v2224_v45  ;;  %v2265_v32 = vpop.permute.xlu0 %2264 }
 0x901   : > { %3138 = vmatpush3.msk.msra.mxu0 %vm2190_vm7, %v2224_v45 }
 0x902   : > { %3140 = vmatmul.mubr.msk.f32.vlgmr.msra.gmra.mxu0 %vm2267_vm5, %v336_v23 }
 0x904   : > { %v2260_v16 = vpop.permute.xlu1 %2259 }
 0x9c2   : > { %v3141_v50 = vpop.f32.mrf.mxu0 }
 0x9c3   : > { %v2344_v34 = vadd.f32 %v3141_v50, %v2265_v32 }
 0x9c4   : > { %v2338_v60 = vpop.f32.mrf.mxu0 }
 0x9c5   : > { %vm2348_vm8 = vcmp.gt.f32.partialorder %v2344_v34, 0.0  ;;  %v2350_v35 = vmul.f32 0.01, %v2344_v34  ;;  %v2339_v0 = vadd.f32 %v2338_v60, %v2260_v16 }
 0x9c7   : > { %v2352_v13 = vsel %vm2348_vm8, %v2344_v34, %v2350_v35  ;;  %vm2347_vm9 = vcmp.gt.f32.partialorder %v2339_v0, 0.0  ;;  %v2349_v15 = vmul.f32 0.01, %v2339_v0 }
 0x9c8   : > { %2356 = vrot.lane.b32.xlu1 %v2352_v13, %s3423_s29 }
 0x9c9   : > { %v2351_v39 = vsel %vm2347_vm9, %v2339_v0, %v2349_v15 }
 0x9ca   : > { %2353 = vrot.lane.b32.xlu0 %v2351_v39, %s3423_s29 }
 0xa3a   : > { %v2357_v28 = vpop.permute.xlu1 %2356 }
 0xa3b   : > { %v2358_v43 = vsel %vm2192_vm4, %v2357_v28, %v2352_v13 }
 0xa3c   : > { %2361 = vrot.lane.b32.xlu1 %v2358_v43, %s3423_s29  ;;  %v2354_v38 = vpop.permute.xlu0 %2353 }
 0xa3d   : > { %v2355_v46 = vsel %vm2192_vm4, %v2354_v38, %v2351_v39 }
 0xa3e   : > { %2359 = vrot.lane.b32.xlu0 %v2355_v46, %s3423_s29  ;;  %s300_s29 = sand.u32 1, %s3408_s25  }
 0xa3f   : > { %s2622_s18 = sshll.u32 %s300_s29, 5  ;;  %s4231_s28 = scalar_lea.sflag [#allocation4], %s300_s29 }
 0xa40   : > { %s302_s19 = scalar_lea.vmem [#allocation7], %s2622_s18 }
 0xa41   : > { %s2530_s23 = sshll.u32 %s302_s19, 4  ;;  %s4224_s23 = int_to_ptr.vmem [resolvable:$true] %s2530_s23 }
 0xa42   : > { %s3348_s9 = scalar_lea.vmem %s4224_s23, 512  ;;  %p3355_p11 = scmp.lt.s32.totalorder %s4224_s23, %s3353_s16 }
 0xa43   : > { %p3349_p10 = scmp.ne.s32.totalorder %s4224_s23, %s3348_s9  ;;  %p3356_p0 = scmp.lt.s32.totalorder %s3354_s13, %s3348_s9 }
 0xa45   : > { %p3350_p12 = pnand %p3349_p10, %p3513_p5  ;;  %p3357_p1 = por %p3356_p0, %p3355_p11 }
 0xa47   : > { %p3351_p8 = pneg %p3350_p12 }
 0xa49   : > { %p3358_p3 = pnand %p3357_p1, %p3351_p8 }
 0xaae   : > { %v2362_v47 = vpop.permute.xlu1 %2361 }
 0xaaf   : > { %v2364_v48 = vsel %vm2192_vm4, %v2362_v47, %v2352_v13 }
 0xab0   : > { %2377 = vrot.lane.b32.xlu1 %v2364_v48, %s3429_s17  ;;  %v2360_v3 = vpop.permute.xlu0 %2359 }
 0xab1   : > { %v2363_v49 = vsel %vm2192_vm4, %v2360_v3, %v2351_v39 }
 0xab2   : > { %2375 = vrot.lane.b32.xlu0 %v2363_v49, %s3429_s17 }
 0xab4   : > { %2369 = vrot.lane.b32.xlu1 %v2364_v48, %s3430_s8 }
 0xab6   : > { %2367 = vrot.lane.b32.xlu0 %v2363_v49, %s3430_s8 }
 0xab8   : > { %2385 = vperm.xlu1 %3235, %v337_v41  }
 0xaba   : > { %2390 = vperm.xlu0 %3234, %v338_v51  }
 0xabc   : > { %2395 = vperm.xlu1 %3235, %v339_v52  }
 0xabe   : > { %2400 = vperm.xlu0 %3234, %v340_v53  }
 0xb22   : > { %v2378_v54 = vpop.permute.xlu1 %2377 }
 0xb23   : > { %3142 = vmatprep.subr.msk.mxu1 %vm2191_vm6, %v2378_v54 }
 0xb24   : > { %3143 = vmatpush3.msk.msra.mxu1 %vm2191_vm6, %v2378_v54  ;;  %v2376_v55 = vpop.permute.xlu0 %2375 }
 0xb25   : > { %3144 = vmatprep.subr.msk.mxu1 %vm2191_vm6, %v2376_v55 }
 0xb26   : > { %3145 = vmatpush3.msk.msra.mxu1 %vm2191_vm6, %v2376_v55  ;;  %v2370_v18 = vpop.permute.xlu1 %2369 }
 0xb27   : > { %3146 = vmatprep.subr.mxu1 %v2352_v13 }
 0xb28   : > { %3147 = vmatpush3.msra.mxu1 %v2352_v13  ;;  %v2368_v61 = vpop.permute.xlu0 %2367 }
 0xb29   : > { %3148 = vmatprep.subr.mxu1 %v2351_v39 }
 0xb2a   : > { %3149 = vmatpush3.msra.mxu1 %v2351_v39 }
 0xb2b   : > { %3150 = vmatprep.subr.msk.mxu1 %vm2190_vm7, %v2370_v18 }
 0xb2c   : > { %3151 = vmatpush3.msk.msra.mxu1 %vm2190_vm7, %v2370_v18 }
 0xb2d   : > { %3152 = vmatprep.subr.msk.mxu1 %vm2190_vm7, %v2368_v61 }
 0xb2e   : > { %3153 = vmatpush3.msk.msra.mxu1 %vm2190_vm7, %v2368_v61 }
 0xb2f   : > { %3155 = vmatmul.mubr.msk.f32.vlgmr.msra.gmra.mxu1 %vm1497_vm3, %v338_v51 }
 0xb30   : > { %3157 = vmatprep.mubr.msk.f32.mxu1 %vm1497_vm3, %v339_v52 }
 0xb33   : > { %3158 = vmatmul.mubr.msk.f32.gmra.mxu1 %vm1497_vm3, %v340_v53  ;;  %v2386_v56 = vpop.permute.xlu1 %2385 }
 0xb35   : > { %v2391_v63 = vpop.permute.xlu0 %2390 }
 0xb37   : > { %v2396_v14 = vpop.permute.xlu1 %2395 }
 0xb39   : > { %v2401_v11 = vpop.permute.xlu0 %2400 }
 0xbef   : > { %v3156_v59 = vpop.f32.mrf.mxu1 }
 0xbf0   : > { %v2483_v2 = vadd.f32 %v3156_v59, %v2391_v63 }
 0xbf1   : > { %v2477_v33 = vpop.f32.mrf.mxu1 }
 0xbf2   : > { %vm2497_vm10 = vcmp.gt.f32.partialorder %v2483_v2, 0.0  ;;  %v2501_v58 = vmul.f32 0.01, %v2483_v2  ;;  %v2478_v36 = vadd.f32 %v2477_v33, %v2386_v56 }
 0xbf3   : > { %v3159_v7 = vpop.f32.mrf.mxu1 }
 0xbf4   : > { %v2505_v25 = vsel %vm2497_vm10, %v2483_v2, %v2501_v58  ;;  %vm2496_vm11 = vcmp.gt.f32.partialorder %v2478_v36, 0.0  ;;  %v2500_v4 = vmul.f32 0.01, %v2478_v36  ;;  %v2493_v8 = vadd.f32 %v3159_v7, %v2401_v11 }
 0xbf5   : > { %v2509_v17 = vadd.f32 %v2505_v25, %v4094_v1  ;;  %v2487_v19 = vpop.f32.mrf.mxu1 }
 0xbf6   : > { %v2504_v37 = vsel %vm2496_vm11, %v2478_v36, %v2500_v4  ;;  %vm2499_vm12 = vcmp.gt.f32.partialorder %v2493_v8, 0.0  ;;  %v2503_v5 = vmul.f32 0.01, %v2493_v8  ;;  %v2488_v44 = vadd.f32 %v2487_v19, %v2396_v14 }
 0xbf7   : > { %2513 = vst.msk [vmem:[%s302_s19 + $0x8] sm:$0xff] %vm349_vm0, %v2509_v17  ;;  %v2508_v9 = vadd.f32 %v2504_v37, %v4099_v10 }
 0xbf8   : > { %v2507_v40 = vsel %vm2499_vm12, %v2493_v8, %v2503_v5  ;;  %vm2498_vm13 = vcmp.gt.f32.partialorder %v2488_v44, 0.0  ;;  %v2502_v20 = vmul.f32 0.01, %v2488_v44 }
 0xbf9   : > { %2512 = vst.msk [vmem:[%s302_s19] sm:$0xff] %vm349_vm0, %v2508_v9  ;;  %v2511_v1 = vadd.f32 %v2507_v40, %v4068_v42 }
 0xbfa   : > { %v2506_v21 = vsel %vm2498_vm13, %v2488_v44, %v2502_v20 }
 0xbfb   : > { %2515 = vst.msk [vmem:[%s302_s19 + $0x18] sm:$0xff] %vm349_vm0, %v2511_v1  ;;  %v2510_v10 = vadd.f32 %v2506_v21, %v4086_v57 }
 0xbfd   : > { %2514 = vst.msk [vmem:[%s302_s19 + $0x10] sm:$0xff] %vm349_vm0, %v2510_v10 }
 0xbfe   : > { %3361 = shalt.err (!%p3358_p3)
}
 0xbff   : > { %s3362_s17 = scalar_lea.hbm %s4222_s22, 512  ;;  %s3366_s18 = scalar_lea.hbm %s4278_s7, 1024 }
 0xc00   : > { %p3363_p2 = scmp.ne.s32.totalorder %s4222_s22, %s3362_s17  ;;  %p3367_p7 = scmp.lt.s32.totalorder %s4222_s22, %s4278_s7 }
 0xc01   : > { %p3368_p6 = scmp.lt.s32.totalorder %s3366_s18, %s3362_s17 }
 0xc02   : > { %p3364_p4 = pnand %p3363_p2, %p3513_p5 }
 0xc03   : > { %p3369_p9 = por %p3368_p6, %p3367_p7 }
 0xc04   : > { %p3365_p13 = pneg %p3364_p4 }
 0xc06   : > { %p3370_p10 = pnand %p3369_p9, %p3365_p13 }
 0xc08   : > { %3373 = shalt.err (!%p3370_p10)
}
 0xc09   : > { %s3433_s14 = smov 128   ;;  %s3434_s21 = smov 8  }
 0xc0a   : > { %3168 = dma.vmem_to_hbm [thread:$0]  (%p3513_p5), %s4224_s23, 512, %s4222_s22, %s4231_s28, %s3433_s14, %s3433_s14, %s3434_s21  }
 0xc0b PF: > { %p3185_p12 = scmp.ge.s32.totalorder %s3416_s27, 2  ;;  %s2545_s9 = sand.u32 1, %s3404_s24  }
 0xc0c   : > { %p4288_p8 = scmp.ne.s32.totalorder %s4281_s12, 0  ;;  %s2546_s15 = scalar_lea.sflag [#allocation4], %s2545_s9 }
 0xc0e   : > { %p3178_p11 = pnand %p3185_p12, %p4288_p8 }
 0xc10   : > { %p3179_p0 = pneg %p3178_p11 }
 0xc12   : > { %3399 = dma.done.wait (%p3179_p0), %s2546_s15, 512  }
 0xc13   : > { %3401 = vsyncadd (%p3179_p0), %s2546_s15, 4294966784  ;;  %p19_p1 = scmp.ge.s32.totalorder %s3500_s30, 4   ;;  %s4289_s24 = smov %s3408_s25 }
 0xc14   : > { %s4290_s25 = smov %s3412_s26  ;;  %s4291_s26 = smov %s3511_s10 }
 0xc15   : > { %s4292_s27 = smov %s3500_s30  ;;  %21 = sbr.rel (!%p19_p1) target bundleno = 5 (0x5), region = 92 }
 0xc1a   :  { %2551 = vsyncpa [#allocation3], 1 }
 0xc1b   :  { %2553 = vsyncpa [#allocation3 + $0x1], 1 }
 0xc1c   :  { %2554 = vsyncpa [#allocation6], 1 }
 0xc1d   :  { %2555 = vsyncpa [#allocation4], 1 }
 0xc1e   :  { %2557 = vsyncpa [#allocation4 + $0x1], 1 }

</bundles_post_ra>
